<compile_context>
chip_gen: v7x
topology: tpu7x:2x2x1
jax: 0.10.0
libtpu: 0.0.40
codegen_flags: <defaults>
</compile_context>

<pallas_src>
import functools
import math

import jax
import jax.numpy as jnp
from jax.experimental import pallas as pl
from jax.experimental.pallas import tpu as pltpu

TILE_M_MAX = 512                          # upper bound; shrunk per layer (see _choose_tile_m)
_VMEM_TILE_BUDGET = 40 * 1024 * 1024      # per-layer working-set target (fits v7x's 64 MiB)

_COMPILER_PARAMS = pltpu.CompilerParams(
    dimension_semantics=("parallel",),    # megacore: split M tiles across TensorCores
    vmem_limit_bytes=48 * 1024 * 1024,    # above default scoped limit, below v7x physical
)


# ----------------------------- Pallas kernels ---------------------------------------

def matmul_affine_act_kernel(p_ref, w_ref, scale_ref, shift_ref, o_ref, *, neg_slope):
    """(TILE_M, K_pad) @ (K_pad, O_pad) on the MXU; fused per-channel affine + LeakyReLU.

    f32 accumulation and epilogue, cast to o_ref.dtype (bf16 for non-final layers) only
    at the store.
    """
    acc = jnp.dot(p_ref[...], w_ref[...], preferred_element_type=jnp.float32)
    y = acc * scale_ref[...] + shift_ref[...]
    if neg_slope is not None:
        y = jnp.where(y >= 0.0, y, neg_slope * y)
    o_ref[...] = y.astype(o_ref.dtype)


def matmul_stats_kernel(p_ref, w_ref, o_ref, sum_ref, sq_ref, *, valid_m):
    """Raw conv matmul + fused per-tile partial sum / sum-of-squares (for batch-stat BN).

    Padded M rows (beyond valid_m) are masked out of the statistics.  The partial stats
    are broadcast across 8 sublanes so the store is a full (8, O_pad) block.
    """
    i = pl.program_id(0)
    tile_m = o_ref.shape[0]
    acc = jnp.dot(p_ref[...], w_ref[...], preferred_element_type=jnp.float32)
    row = i * tile_m + jax.lax.broadcasted_iota(jnp.int32, acc.shape, 0)
    masked = jnp.where(row < valid_m, acc, 0.0)
    o_ref[...] = acc.astype(o_ref.dtype)
    s = jnp.sum(masked, axis=0, keepdims=True)            # (1, O_pad)
    q = jnp.sum(masked * masked, axis=0, keepdims=True)   # (1, O_pad)
    sum_ref[...] = jnp.broadcast_to(s.reshape(1, 1, -1), sum_ref.shape)
    sq_ref[...] = jnp.broadcast_to(q.reshape(1, 1, -1), sq_ref.shape)


def affine_act_kernel(x_ref, scale_ref, shift_ref, o_ref, *, neg_slope):
    """Per-channel affine (folded batch-norm) + LeakyReLU; f32 in, bf16 out."""
    y = x_ref[...] * scale_ref[...] + shift_ref[...]
    if neg_slope is not None:
        y = jnp.where(y >= 0.0, y, neg_slope * y)
    o_ref[...] = y.astype(o_ref.dtype)


# ----------------------------- helpers ----------------------------------------------

def _round_up(n, m):
    return ((n + m - 1) // m) * m


def _pad_axis(x, size, axis):
    pad = size - x.shape[axis]
    if pad == 0:
        return x
    widths = [(0, 0)] * x.ndim
    widths[axis] = (0, pad)
    return jnp.pad(x, widths)


def _choose_tile_m(m, k_pad, o_pad, out_bytes):
    """Largest M tile that (a) fits the VMEM budget with double-buffered operands and
    (b) gives the grid >= 2 steps so both v7x TensorCores get work (no-op on v5e/v6e)."""
    def footprint(t):
        return (2 * t * k_pad * 2          # double-buffered bf16 patch tile
                + 2 * k_pad * o_pad * 2    # resident bf16 weight (counted twice: conservative)
                + 2 * t * o_pad * out_bytes
                + 4 * o_pad * 4)           # scale / shift
    tile = TILE_M_MAX
    while tile > 8 and footprint(tile) > _VMEM_TILE_BUDGET:
        tile //= 2
    while tile > 8 and pl.cdiv(m, tile) < 2:
        tile //= 2
    return max(tile, 8)


# ----------------------------- pallas_call wrappers ----------------------------------

def _conv_matmul_affine(patches, w_ko, scale, shift, neg_slope, tile_m, out_dtype):
    m_pad, k_pad = patches.shape
    o_pad = w_ko.shape[1]
    return pl.pallas_call(
        functools.partial(matmul_affine_act_kernel, neg_slope=neg_slope),
        grid=(m_pad // tile_m,),
        in_specs=[
            pl.BlockSpec((tile_m, k_pad), lambda i: (i, 0)),   # patch rows, pipelined
            pl.BlockSpec((k_pad, o_pad), lambda i: (0, 0)),    # weight, resident
            pl.BlockSpec((1, o_pad), lambda i: (0, 0)),        # per-channel scale
            pl.BlockSpec((1, o_pad), lambda i: (0, 0)),        # per-channel shift
        ],
        out_specs=pl.BlockSpec((tile_m, o_pad), lambda i: (i, 0)),
        out_shape=jax.ShapeDtypeStruct((m_pad, o_pad), out_dtype),
        compiler_params=_COMPILER_PARAMS,
    )(patches, w_ko, scale, shift)


def _conv_matmul_stats(patches, w_ko, tile_m, valid_m):
    m_pad, k_pad = patches.shape
    o_pad = w_ko.shape[1]
    n_tiles = m_pad // tile_m
    return pl.pallas_call(
        functools.partial(matmul_stats_kernel, valid_m=valid_m),
        grid=(n_tiles,),
        in_specs=[
            pl.BlockSpec((tile_m, k_pad), lambda i: (i, 0)),
            pl.BlockSpec((k_pad, o_pad), lambda i: (0, 0)),
        ],
        out_specs=[
            pl.BlockSpec((tile_m, o_pad), lambda i: (i, 0)),
            pl.BlockSpec((1, 8, o_pad), lambda i: (i, 0, 0)),
            pl.BlockSpec((1, 8, o_pad), lambda i: (i, 0, 0)),
        ],
        out_shape=(
            jax.ShapeDtypeStruct((m_pad, o_pad), jnp.float32),     # raw conv (f32 for BN)
            jax.ShapeDtypeStruct((n_tiles, 8, o_pad), jnp.float32),
            jax.ShapeDtypeStruct((n_tiles, 8, o_pad), jnp.float32),
        ),
        compiler_params=_COMPILER_PARAMS,
    )(patches, w_ko)


def _affine_act(x, scale, shift, neg_slope, tile_m, out_dtype):
    m_pad, o_pad = x.shape
    return pl.pallas_call(
        functools.partial(affine_act_kernel, neg_slope=neg_slope),
        grid=(m_pad // tile_m,),
        in_specs=[
            pl.BlockSpec((tile_m, o_pad), lambda i: (i, 0)),
            pl.BlockSpec((1, o_pad), lambda i: (0, 0)),
            pl.BlockSpec((1, o_pad), lambda i: (0, 0)),
        ],
        out_specs=pl.BlockSpec((tile_m, o_pad), lambda i: (i, 0)),
        out_shape=jax.ShapeDtypeStruct((m_pad, o_pad), out_dtype),
        compiler_params=_COMPILER_PARAMS,
    )(x, scale, shift)


# ----------------------------- one discriminator layer -------------------------------

def conv2d_block(x_nhwc, w_oihw, bias, *, stride, padding, neg_slope, bn, is_last):
    """Conv2d(k=4) [+ BatchNorm2d (batch stats)] [+ LeakyReLU] on NHWC activations.

    x_nhwc may carry zero-padded extra channels from the previous layer; the weight is
    zero-padded along its input-channel dim to match, so the result is unchanged.
    """
    n, h, w_in, c_phys = x_nhwc.shape
    o, c_log, kh, kw = w_oihw.shape
    assert c_phys >= c_log
    ho = (h + 2 * padding - kh) // stride + 1
    wo = (w_in + 2 * padding - kw) // stride + 1

    # bf16 BEFORE im2col: the kh*kw-inflated patch tensor is built/stored in bf16.
    x = x_nhwc.astype(jnp.bfloat16)
    xp = jnp.pad(x, ((0, 0), (padding, padding), (padding, padding), (0, 0)))
    taps = [
        xp[:, dy:dy + stride * (ho - 1) + 1:stride,
              dx:dx + stride * (wo - 1) + 1:stride, :]
        for dy in range(kh) for dx in range(kw)
    ]
    m = n * ho * wo
    k = kh * kw * c_phys
    patches = jnp.stack(taps, axis=3).reshape(m, k)
    # TODO(synk): replace the XLA-side im2col above with in-kernel halo-DMA + shifted
    # matmuls to remove the kh*kw-fold activation duplication in HBM.

    k_pad = _round_up(k, 128)
    o_pad = _round_up(o, 128)              # lane-dense output stores
    out_bytes = 2 if (bn is None and not is_last) else 4
    tile_m = _choose_tile_m(m, k_pad, o_pad, out_bytes)
    m_pad = _round_up(m, tile_m)
    patches = _pad_axis(_pad_axis(patches, k_pad, 1), m_pad, 0)
    layer_dtype = jnp.float32 if is_last else jnp.bfloat16

    # Weight: zero-pad input channels to the (possibly channel-padded) activation, then
    # pre-transpose/flatten to (K, O) = ((dy, dx, c), O) — no in-kernel transpose.
    w = _pad_axis(w_oihw, c_phys, 1)
    w_ko = jnp.transpose(w, (2, 3, 1, 0)).reshape(k, o)
    w_ko = _pad_axis(_pad_axis(w_ko, k_pad, 0), o_pad, 1).astype(jnp.bfloat16)

    if bn is None:
        scale = jnp.ones((1, o_pad), jnp.float32)
        shift = _pad_axis(bias.reshape(1, o), o_pad, 1).astype(jnp.float32)
        out = _conv_matmul_affine(patches, w_ko, scale, shift, neg_slope, tile_m, layer_dtype)
    else:
        # Training-mode BatchNorm: raw conv with fused per-tile partial statistics (the
        # conv bias cancels exactly under batch-stat normalization, so it is skipped),
        # tiny reduction over tiles in XLA, then fused affine + LeakyReLU in bf16.
        conv, sums, sqs = _conv_matmul_stats(patches, w_ko, tile_m, m)
        col_sum = jnp.sum(sums[:, 0, :], axis=0)
        col_sq = jnp.sum(sqs[:, 0, :], axis=0)
        mean = col_sum / m
        var = jnp.maximum(col_sq / m - mean * mean, 0.0)   # biased, like torch BN (train)
        inv_std = jax.lax.rsqrt(var + bn["eps"])
        gamma = _pad_axis(bn["gamma"], o_pad, 0)           # padded channels -> scale/shift 0
        beta = _pad_axis(bn["beta"], o_pad, 0)
        ch_scale = (gamma * inv_std).reshape(1, o_pad).astype(jnp.float32)
        ch_shift = (beta - mean * gamma * inv_std).reshape(1, o_pad).astype(jnp.float32)
        out = _affine_act(conv, ch_scale, ch_shift, neg_slope, tile_m, layer_dtype)

    # Carry the padded channel dim only when it costs nothing downstream (o already a
    # multiple of 128); otherwise slice so the next layer's im2col K does not inflate.
    if (not is_last) and (o % 128 == 0):
        return out[:m].reshape(n, ho, wo, o_pad)
    return out[:m, :o].reshape(n, ho, wo, o)


# ----------------------------- full discriminator ------------------------------------

def make_discriminator_params(key, input_nc, ndf, n_layers):
    kw_, padw = 4, 2  # padw = int(np.ceil((kw - 1.0) / 2)) = 2
    cfgs = [dict(cin=input_nc, cout=ndf, stride=2, use_bn=False, act=True)]
    nf = ndf
    for _ in range(1, n_layers):
        nf_prev, nf = nf, min(nf * 2, 512)
        cfgs.append(dict(cin=nf_prev, cout=nf, stride=2, use_bn=True, act=True))
    nf_prev, nf = nf, min(nf * 2, 512)
    cfgs.append(dict(cin=nf_prev, cout=nf, stride=1, use_bn=True, act=True))
    cfgs.append(dict(cin=nf, cout=1, stride=1, use_bn=False, act=False))

    params = []
    for cfg in cfgs:
        key, k_w, k_b = jax.random.split(key, 3)
        bound = 1.0 / math.sqrt(cfg["cin"] * kw_ * kw_)  # torch Conv2d default init range
        w = jax.random.uniform(k_w, (cfg["cout"], cfg["cin"], kw_, kw_),
                               jnp.float32, -bound, bound)
        b = jax.random.uniform(k_b, (cfg["cout"],), jnp.float32, -bound, bound)
        bn = None
        if cfg["use_bn"]:
            bn = dict(gamma=jnp.ones((cfg["cout"],), jnp.float32),
                      beta=jnp.zeros((cfg["cout"],), jnp.float32),
                      eps=1e-5)
        params.append(dict(w=w, b=b, stride=cfg["stride"], padding=padw,
                           neg_slope=0.2 if cfg["act"] else None, bn=bn))
    return params


def nlayer_discriminator_forward(x_nchw, params):
    x = jnp.transpose(x_nchw, (0, 2, 3, 1))          # NCHW -> NHWC exactly once
    last = len(params) - 1
    for idx, p in enumerate(params):
        x = conv2d_block(x, p["w"], p["b"], stride=p["stride"], padding=p["padding"],
                         neg_slope=p["neg_slope"], bn=p["bn"], is_last=(idx == last))
    return jnp.transpose(x, (0, 3, 1, 2))            # back to NCHW at the boundary


# Pure-XLA reference (same bf16 MXU inputs / rounding points) used only as a check.
def reference_forward(x_nchw, params):
    x = jnp.transpose(x_nchw, (0, 2, 3, 1))
    for p in params:
        w = jnp.transpose(p["w"], (2, 3, 1, 0))
        xb = x.astype(jnp.bfloat16).astype(jnp.float32)
        wb = w.astype(jnp.bfloat16).astype(jnp.float32)
        y = jax.lax.conv_general_dilated(
            xb, wb, window_strides=(p["stride"], p["stride"]),
            padding=[(p["padding"], p["padding"])] * 2,
            dimension_numbers=("NHWC", "HWIO", "NHWC"),
            preferred_element_type=jnp.float32)
        if p["bn"] is None:
            y = y + p["b"][None, None, None, :]
        else:
            mean = jnp.mean(y, axis=(0, 1, 2))
            var = jnp.mean(jnp.square(y), axis=(0, 1, 2)) - mean * mean
            y = (y - mean) * jax.lax.rsqrt(var + p["bn"]["eps"]) * p["bn"]["gamma"] + p["bn"]["beta"]
        if p["neg_slope"] is not None:
            y = jnp.where(y >= 0.0, y, p["neg_slope"] * y)
        x = y
    return jnp.transpose(x, (0, 3, 1, 2))


if __name__ == "__main__":
    key = jax.random.PRNGKey(0)
    k_params, k_x = jax.random.split(key)

    # Small config consistent with the module: input_nc=3, ndf=8, n_layers=3.
    N, C, H, W = 2, 3, 16, 16
    params = make_discriminator_params(k_params, input_nc=C, ndf=8, n_layers=3)
    x = jax.random.normal(k_x, (N, C, H, W), dtype=jnp.float32)

    fwd = jax.jit(lambda inp: nlayer_discriminator_forward(inp, params))
    ref = jax.jit(lambda inp: reference_forward(inp, params))

    y = fwd(x)
    jax.block_until_ready(y)

    # 16x16 input -> 9 -> 5 -> 3 -> 4 -> 5 spatial, 1 output channel.
    assert y.shape == (N, 1, 5, 5), y.shape

    y_ref = ref(x)
    jax.block_until_ready(y_ref)
    max_err = float(jnp.max(jnp.abs(y - y_ref)))
    assert max_err < 5e-2, f"mismatch vs XLA reference: {max_err}"

    print("KERNEL_OK")
</pallas_src>

<mosaic_0001>
module attributes {stable_mosaic.version = 11 : i64} {
  func.func @matmul_affine_act_kernel(%arg0: i32, %arg1: memref<128x128xbf16, #tpu.memory_space<vmem>>, %arg2: memref<128x128xbf16, #tpu.memory_space<vmem>>, %arg3: memref<1x128xf32, #tpu.memory_space<vmem>>, %arg4: memref<1x128xf32, #tpu.memory_space<vmem>>, %arg5: memref<128x128xbf16, #tpu.memory_space<vmem>>) attributes {dimension_semantics = [#tpu.dimension_semantics<parallel>], iteration_bounds = array<i64: 2>, scalar_prefetch = 0 : i64, scratch_operands = 0 : i64, tpu.core_type = #tpu.core_type<tc>, window_params = [{transform_indices = @transform_0, window_bounds = array<i64: 128, 128>}, {pipeline_mode = #tpu.pipeline_mode<synchronous>, transform_indices = @transform_1, window_bounds = array<i64: 128, 128>}, {pipeline_mode = #tpu.pipeline_mode<synchronous>, transform_indices = @transform_2, window_bounds = array<i64: 1, 128>}, {pipeline_mode = #tpu.pipeline_mode<synchronous>, transform_indices = @transform_3, window_bounds = array<i64: 1, 128>}, {transform_indices = @transform_4, window_bounds = array<i64: 128, 128>}]} {
    %c0 = arith.constant 0 : index
    %c0_0 = arith.constant 0 : index
    %0 = vector.load %arg1[%c0, %c0_0] : memref<128x128xbf16, #tpu.memory_space<vmem>>, vector<128x128xbf16>
    %c0_1 = arith.constant 0 : index
    %c0_2 = arith.constant 0 : index
    %1 = vector.load %arg2[%c0_1, %c0_2] : memref<128x128xbf16, #tpu.memory_space<vmem>>, vector<128x128xbf16>
    %cst = arith.constant dense<0.000000e+00> : vector<128x128xf32>
    %2 = tpu.matmul %0, %1, %cst {dimension_numbers = #tpu.dot_dimension_numbers<[1], [0], [0], [1], [0, 0, 1, 1], [], []>} : vector<128x128xbf16>, vector<128x128xbf16>, vector<128x128xf32> -> vector<128x128xf32>
    %c0_3 = arith.constant 0 : index
    %c0_4 = arith.constant 0 : index
    %3 = vector.load %arg3[%c0_3, %c0_4] : memref<1x128xf32, #tpu.memory_space<vmem>>, vector<1x128xf32>
    %4 = vector.broadcast %3 : vector<1x128xf32> to vector<128x128xf32>
    %5 = arith.mulf %2, %4 : vector<128x128xf32>
    %c0_5 = arith.constant 0 : index
    %c0_6 = arith.constant 0 : index
    %6 = vector.load %arg4[%c0_5, %c0_6] : memref<1x128xf32, #tpu.memory_space<vmem>>, vector<1x128xf32>
    %7 = vector.broadcast %6 : vector<1x128xf32> to vector<128x128xf32>
    %8 = arith.addf %5, %7 : vector<128x128xf32>
    %cst_7 = arith.constant 0.000000e+00 : f32
    %9 = vector.broadcast %cst_7 : f32 to vector<128x128xf32>
    %10 = arith.cmpf oge, %8, %9 : vector<128x128xf32>
    %cst_8 = arith.constant 2.000000e-01 : f32
    %11 = vector.broadcast %cst_8 : f32 to vector<128x128xf32>
    %12 = arith.mulf %11, %8 : vector<128x128xf32>
    %13 = arith.select %10, %8, %12 : vector<128x128xi1>, vector<128x128xf32>
    %14 = arith.truncf %13 : vector<128x128xf32> to vector<128x128xbf16>
    %c0_9 = arith.constant 0 : index
    %c0_10 = arith.constant 0 : index
    %15 = vector.load %arg5[%c0_9, %c0_10] : memref<128x128xbf16, #tpu.memory_space<vmem>>, vector<128x128xbf16>
    tpu.vector_store %arg5[%c0_9, %c0_10], %14 {strides = array<i32>} : memref<128x128xbf16, #tpu.memory_space<vmem>>, vector<128x128xbf16>,
    return
  }
  func.func @transform_0(%arg0: i32) -> (i32, i32) {
    %c0_i32 = arith.constant 0 : i32
    %c0_i32_0 = arith.constant 0 : i32
    return %arg0, %c0_i32 : i32, i32
  }
  func.func @transform_1(%arg0: i32) -> (i32, i32) {
    %c0_i32 = arith.constant 0 : i32
    %c0_i32_0 = arith.constant 0 : i32
    %c0_i32_1 = arith.constant 0 : i32
    return %c0_i32, %c0_i32_0 : i32, i32
  }
  func.func @transform_2(%arg0: i32) -> (i32, i32) {
    %c0_i32 = arith.constant 0 : i32
    %c0_i32_0 = arith.constant 0 : i32
    %c0_i32_1 = arith.constant 0 : i32
    return %c0_i32, %c0_i32_0 : i32, i32
  }
  func.func @transform_3(%arg0: i32) -> (i32, i32) {
    %c0_i32 = arith.constant 0 : i32
    %c0_i32_0 = arith.constant 0 : i32
    %c0_i32_1 = arith.constant 0 : i32
    return %c0_i32, %c0_i32_0 : i32, i32
  }
  func.func @transform_4(%arg0: i32) -> (i32, i32) {
    %c0_i32 = arith.constant 0 : i32
    %c0_i32_0 = arith.constant 0 : i32
    return %arg0, %c0_i32 : i32, i32
  }
}

module attributes {stable_mosaic.version = 11 : i64} {
  func.func @affine_act_kernel(%arg0: i32, %arg1: memref<32x128xf32, #tpu.memory_space<vmem>>, %arg2: memref<1x128xf32, #tpu.memory_space<vmem>>, %arg3: memref<1x128xf32, #tpu.memory_space<vmem>>, %arg4: memref<32x128xbf16, #tpu.memory_space<vmem>>) attributes {dimension_semantics = [#tpu.dimension_semantics<parallel>], iteration_bounds = array<i64: 2>, scalar_prefetch = 0 : i64, scratch_operands = 0 : i64, tpu.core_type = #tpu.core_type<tc>, window_params = [{transform_indices = @transform_0, window_bounds = array<i64: 32, 128>}, {pipeline_mode = #tpu.pipeline_mode<synchronous>, transform_indices = @transform_1, window_bounds = array<i64: 1, 128>}, {pipeline_mode = #tpu.pipeline_mode<synchronous>, transform_indices = @transform_2, window_bounds = array<i64: 1, 128>}, {transform_indices = @transform_3, window_bounds = array<i64: 32, 128>}]} {
    %c0 = arith.constant 0 : index
    %c0_0 = arith.constant 0 : index
    %0 = vector.load %arg1[%c0, %c0_0] : memref<32x128xf32, #tpu.memory_space<vmem>>, vector<32x128xf32>
    %c0_1 = arith.constant 0 : index
    %c0_2 = arith.constant 0 : index
    %1 = vector.load %arg2[%c0_1, %c0_2] : memref<1x128xf32, #tpu.memory_space<vmem>>, vector<1x128xf32>
    %2 = vector.broadcast %1 : vector<1x128xf32> to vector<32x128xf32>
    %3 = arith.mulf %0, %2 : vector<32x128xf32>
    %c0_3 = arith.constant 0 : index
    %c0_4 = arith.constant 0 : index
    %4 = vector.load %arg3[%c0_3, %c0_4] : memref<1x128xf32, #tpu.memory_space<vmem>>, vector<1x128xf32>
    %5 = vector.broadcast %4 : vector<1x128xf32> to vector<32x128xf32>
    %6 = arith.addf %3, %5 : vector<32x128xf32>
    %cst = arith.constant 0.000000e+00 : f32
    %7 = vector.broadcast %cst : f32 to vector<32x128xf32>
    %8 = arith.cmpf oge, %6, %7 : vector<32x128xf32>
    %cst_5 = arith.constant 2.000000e-01 : f32
    %9 = vector.broadcast %cst_5 : f32 to vector<32x128xf32>
    %10 = arith.mulf %9, %6 : vector<32x128xf32>
    %11 = arith.select %8, %6, %10 : vector<32x128xi1>, vector<32x128xf32>
    %12 = arith.truncf %11 : vector<32x128xf32> to vector<32x128xbf16>
    %c0_6 = arith.constant 0 : index
    %c0_7 = arith.constant 0 : index
    %13 = vector.load %arg4[%c0_6, %c0_7] : memref<32x128xbf16, #tpu.memory_space<vmem>>, vector<32x128xbf16>
    tpu.vector_store %arg4[%c0_6, %c0_7], %12 {strides = array<i32>} : memref<32x128xbf16, #tpu.memory_space<vmem>>, vector<32x128xbf16>,
    return
  }
  func.func @transform_0(%arg0: i32) -> (i32, i32) {
    %c0_i32 = arith.constant 0 : i32
    %c0_i32_0 = arith.constant 0 : i32
    return %arg0, %c0_i32 : i32, i32
  }
  func.func @transform_1(%arg0: i32) -> (i32, i32) {
    %c0_i32 = arith.constant 0 : i32
    %c0_i32_0 = arith.constant 0 : i32
    %c0_i32_1 = arith.constant 0 : i32
    return %c0_i32, %c0_i32_0 : i32, i32
  }
  func.func @transform_2(%arg0: i32) -> (i32, i32) {
    %c0_i32 = arith.constant 0 : i32
    %c0_i32_0 = arith.constant 0 : i32
    %c0_i32_1 = arith.constant 0 : i32
    return %c0_i32, %c0_i32_0 : i32, i32
  }
  func.func @transform_3(%arg0: i32) -> (i32, i32) {
    %c0_i32 = arith.constant 0 : i32
    %c0_i32_0 = arith.constant 0 : i32
    return %arg0, %c0_i32 : i32, i32
  }
}

module attributes {stable_mosaic.version = 11 : i64} {
  func.func @matmul_stats_kernel(%arg0: i32, %arg1: memref<32x128xbf16, #tpu.memory_space<vmem>>, %arg2: memref<128x128xbf16, #tpu.memory_space<vmem>>, %arg3: memref<32x128xf32, #tpu.memory_space<vmem>>, %arg4: memref<1x8x128xf32, #tpu.memory_space<vmem>>, %arg5: memref<1x8x128xf32, #tpu.memory_space<vmem>>) attributes {dimension_semantics = [#tpu.dimension_semantics<parallel>], iteration_bounds = array<i64: 2>, scalar_prefetch = 0 : i64, scratch_operands = 0 : i64, tpu.core_type = #tpu.core_type<tc>, window_params = [{transform_indices = @transform_0, window_bounds = array<i64: 32, 128>}, {pipeline_mode = #tpu.pipeline_mode<synchronous>, transform_indices = @transform_1, window_bounds = array<i64: 128, 128>}, {transform_indices = @transform_2, window_bounds = array<i64: 32, 128>}, {transform_indices = @transform_3, window_bounds = array<i64: 1, 8, 128>}, {transform_indices = @transform_4, window_bounds = array<i64: 1, 8, 128>}]} {
    %c0 = arith.constant 0 : index
    %c0_0 = arith.constant 0 : index
    %0 = vector.load %arg1[%c0, %c0_0] : memref<32x128xbf16, #tpu.memory_space<vmem>>, vector<32x128xbf16>
    %c0_1 = arith.constant 0 : index
    %c0_2 = arith.constant 0 : index
    %1 = vector.load %arg2[%c0_1, %c0_2] : memref<128x128xbf16, #tpu.memory_space<vmem>>, vector<128x128xbf16>
    %cst = arith.constant dense<0.000000e+00> : vector<32x128xf32>
    %2 = tpu.matmul %0, %1, %cst {dimension_numbers = #tpu.dot_dimension_numbers<[1], [0], [0], [1], [0, 0, 1, 1], [], []>} : vector<32x128xbf16>, vector<128x128xbf16>, vector<32x128xf32> -> vector<32x128xf32>
    %c32_i32 = arith.constant 32 : i32
    %3 = arith.muli %arg0, %c32_i32 : i32
    %4 = tpu.iota {dimensions = array<i32: 0>} : vector<32x128xi32>
    %5 = vector.broadcast %3 : i32 to vector<32x128xi32>
    %6 = arith.addi %5, %4 : vector<32x128xi32>
    %c50_i32 = arith.constant 50 : i32
    %7 = vector.broadcast %c50_i32 : i32 to vector<32x128xi32>
    %8 = arith.cmpi slt, %6, %7 : vector<32x128xi32>
    %cst_3 = arith.constant 0.000000e+00 : f32
    %9 = vector.broadcast %cst_3 : f32 to vector<32x128xf32>
    %10 = arith.select %8, %2, %9 : vector<32x128xi1>, vector<32x128xf32>
    %c0_4 = arith.constant 0 : index
    %c0_5 = arith.constant 0 : index
    %11 = vector.load %arg3[%c0_4, %c0_5] : memref<32x128xf32, #tpu.memory_space<vmem>>, vector<32x128xf32>
    tpu.vector_store %arg3[%c0_4, %c0_5], %2 {strides = array<i32>} : memref<32x128xf32, #tpu.memory_space<vmem>>, vector<32x128xf32>,
    %cst_6 = arith.constant dense<0.000000e+00> : vector<128xf32>
    %12 = vector.multi_reduction <add>, %10, %cst_6 [0] : vector<32x128xf32> to vector<128xf32>
    %13 = vector.shape_cast %12 : vector<128xf32> to vector<1x128xf32>
    %14 = arith.mulf %10, %10 : vector<32x128xf32>
    %cst_7 = arith.constant dense<0.000000e+00> : vector<128xf32>
    %15 = vector.multi_reduction <add>, %14, %cst_7 [0] : vector<32x128xf32> to vector<128xf32>
    %16 = vector.shape_cast %15 : vector<128xf32> to vector<1x128xf32>
    %17 = vector.shape_cast %13 : vector<1x128xf32> to vector<1x1x128xf32>
    %18 = vector.shape_cast %17 : vector<1x1x128xf32> to vector<1x1x128xf32>
    %19 = vector.broadcast %18 : vector<1x1x128xf32> to vector<1x8x128xf32>
    %c0_8 = arith.constant 0 : index
    %c0_9 = arith.constant 0 : index
    %c0_10 = arith.constant 0 : index
    %20 = vector.load %arg4[%c0_8, %c0_9, %c0_10] : memref<1x8x128xf32, #tpu.memory_space<vmem>>, vector<1x8x128xf32>
    tpu.vector_store %arg4[%c0_8, %c0_9, %c0_10], %19 {strides = array<i32>} : memref<1x8x128xf32, #tpu.memory_space<vmem>>, vector<1x8x128xf32>,
    %21 = vector.shape_cast %16 : vector<1x128xf32> to vector<1x1x128xf32>
    %22 = vector.shape_cast %21 : vector<1x1x128xf32> to vector<1x1x128xf32>
    %23 = vector.broadcast %22 : vector<1x1x128xf32> to vector<1x8x128xf32>
    %c0_11 = arith.constant 0 : index
    %c0_12 = arith.constant 0 : index
    %c0_13 = arith.constant 0 : index
    %24 = vector.load %arg5[%c0_11, %c0_12, %c0_13] : memref<1x8x128xf32, #tpu.memory_space<vmem>>, vector<1x8x128xf32>
    tpu.vector_store %arg5[%c0_11, %c0_12, %c0_13], %23 {strides = array<i32>} : memref<1x8x128xf32, #tpu.memory_space<vmem>>, vector<1x8x128xf32>,
    return
  }
  func.func @transform_0(%arg0: i32) -> (i32, i32) {
    %c0_i32 = arith.constant 0 : i32
    %c0_i32_0 = arith.constant 0 : i32
    return %arg0, %c0_i32 : i32, i32
  }
  func.func @transform_1(%arg0: i32) -> (i32, i32) {
    %c0_i32 = arith.constant 0 : i32
    %c0_i32_0 = arith.constant 0 : i32
    %c0_i32_1 = arith.constant 0 : i32
    return %c0_i32, %c0_i32_0 : i32, i32
  }
  func.func @transform_2(%arg0: i32) -> (i32, i32) {
    %c0_i32 = arith.constant 0 : i32
    %c0_i32_0 = arith.constant 0 : i32
    return %arg0, %c0_i32 : i32, i32
  }
  func.func @transform_3(%arg0: i32) -> (i32, i32, i32) {
    %c0_i32 = arith.constant 0 : i32
    %c0_i32_0 = arith.constant 0 : i32
    %c0_i32_1 = arith.constant 0 : i32
    return %arg0, %c0_i32, %c0_i32_0 : i32, i32, i32
  }
  func.func @transform_4(%arg0: i32) -> (i32, i32, i32) {
    %c0_i32 = arith.constant 0 : i32
    %c0_i32_0 = arith.constant 0 : i32
    %c0_i32_1 = arith.constant 0 : i32
    return %arg0, %c0_i32, %c0_i32_0 : i32, i32, i32
  }
}

module attributes {stable_mosaic.version = 11 : i64} {
  func.func @matmul_stats_kernel(%arg0: i32, %arg1: memref<16x256xbf16, #tpu.memory_space<vmem>>, %arg2: memref<256x128xbf16, #tpu.memory_space<vmem>>, %arg3: memref<16x128xf32, #tpu.memory_space<vmem>>, %arg4: memref<1x8x128xf32, #tpu.memory_space<vmem>>, %arg5: memref<1x8x128xf32, #tpu.memory_space<vmem>>) attributes {dimension_semantics = [#tpu.dimension_semantics<parallel>], iteration_bounds = array<i64: 2>, scalar_prefetch = 0 : i64, scratch_operands = 0 : i64, tpu.core_type = #tpu.core_type<tc>, window_params = [{transform_indices = @transform_0, window_bounds = array<i64: 16, 256>}, {pipeline_mode = #tpu.pipeline_mode<synchronous>, transform_indices = @transform_1, window_bounds = array<i64: 256, 128>}, {transform_indices = @transform_2, window_bounds = array<i64: 16, 128>}, {transform_indices = @transform_3, window_bounds = array<i64: 1, 8, 128>}, {transform_indices = @transform_4, window_bounds = array<i64: 1, 8, 128>}]} {
    %c0 = arith.constant 0 : index
    %c0_0 = arith.constant 0 : index
    %0 = vector.load %arg1[%c0, %c0_0] : memref<16x256xbf16, #tpu.memory_space<vmem>>, vector<16x256xbf16>
    %c0_1 = arith.constant 0 : index
    %c0_2 = arith.constant 0 : index
    %1 = vector.load %arg2[%c0_1, %c0_2] : memref<256x128xbf16, #tpu.memory_space<vmem>>, vector<256x128xbf16>
    %cst = arith.constant dense<0.000000e+00> : vector<16x128xf32>
    %2 = tpu.matmul %0, %1, %cst {dimension_numbers = #tpu.dot_dimension_numbers<[1], [0], [0], [1], [0, 0, 1, 1], [], []>} : vector<16x256xbf16>, vector<256x128xbf16>, vector<16x128xf32> -> vector<16x128xf32>
    %c16_i32 = arith.constant 16 : i32
    %3 = arith.muli %arg0, %c16_i32 : i32
    %4 = tpu.iota {dimensions = array<i32: 0>} : vector<16x128xi32>
    %5 = vector.broadcast %3 : i32 to vector<16x128xi32>
    %6 = arith.addi %5, %4 : vector<16x128xi32>
    %c18_i32 = arith.constant 18 : i32
    %7 = vector.broadcast %c18_i32 : i32 to vector<16x128xi32>
    %8 = arith.cmpi slt, %6, %7 : vector<16x128xi32>
    %cst_3 = arith.constant 0.000000e+00 : f32
    %9 = vector.broadcast %cst_3 : f32 to vector<16x128xf32>
    %10 = arith.select %8, %2, %9 : vector<16x128xi1>, vector<16x128xf32>
    %c0_4 = arith.constant 0 : index
    %c0_5 = arith.constant 0 : index
    %11 = vector.load %arg3[%c0_4, %c0_5] : memref<16x128xf32, #tpu.memory_space<vmem>>, vector<16x128xf32>
    tpu.vector_store %arg3[%c0_4, %c0_5], %2 {strides = array<i32>} : memref<16x128xf32, #tpu.memory_space<vmem>>, vector<16x128xf32>,
    %cst_6 = arith.constant dense<0.000000e+00> : vector<128xf32>
    %12 = vector.multi_reduction <add>, %10, %cst_6 [0] : vector<16x128xf32> to vector<128xf32>
    %13 = vector.shape_cast %12 : vector<128xf32> to vector<1x128xf32>
    %14 = arith.mulf %10, %10 : vector<16x128xf32>
    %cst_7 = arith.constant dense<0.000000e+00> : vector<128xf32>
    %15 = vector.multi_reduction <add>, %14, %cst_7 [0] : vector<16x128xf32> to vector<128xf32>
    %16 = vector.shape_cast %15 : vector<128xf32> to vector<1x128xf32>
    %17 = vector.shape_cast %13 : vector<1x128xf32> to vector<1x1x128xf32>
    %18 = vector.shape_cast %17 : vector<1x1x128xf32> to vector<1x1x128xf32>
    %19 = vector.broadcast %18 : vector<1x1x128xf32> to vector<1x8x128xf32>
    %c0_8 = arith.constant 0 : index
    %c0_9 = arith.constant 0 : index
    %c0_10 = arith.constant 0 : index
    %20 = vector.load %arg4[%c0_8, %c0_9, %c0_10] : memref<1x8x128xf32, #tpu.memory_space<vmem>>, vector<1x8x128xf32>
    tpu.vector_store %arg4[%c0_8, %c0_9, %c0_10], %19 {strides = array<i32>} : memref<1x8x128xf32, #tpu.memory_space<vmem>>, vector<1x8x128xf32>,
    %21 = vector.shape_cast %16 : vector<1x128xf32> to vector<1x1x128xf32>
    %22 = vector.shape_cast %21 : vector<1x1x128xf32> to vector<1x1x128xf32>
    %23 = vector.broadcast %22 : vector<1x1x128xf32> to vector<1x8x128xf32>
    %c0_11 = arith.constant 0 : index
    %c0_12 = arith.constant 0 : index
    %c0_13 = arith.constant 0 : index
    %24 = vector.load %arg5[%c0_11, %c0_12, %c0_13] : memref<1x8x128xf32, #tpu.memory_space<vmem>>, vector<1x8x128xf32>
    tpu.vector_store %arg5[%c0_11, %c0_12, %c0_13], %23 {strides = array<i32>} : memref<1x8x128xf32, #tpu.memory_space<vmem>>, vector<1x8x128xf32>,
    return
  }
  func.func @transform_0(%arg0: i32) -> (i32, i32) {
    %c0_i32 = arith.constant 0 : i32
    %c0_i32_0 = arith.constant 0 : i32
    return %arg0, %c0_i32 : i32, i32
  }
  func.func @transform_1(%arg0: i32) -> (i32, i32) {
    %c0_i32 = arith.constant 0 : i32
    %c0_i32_0 = arith.constant 0 : i32
    %c0_i32_1 = arith.constant 0 : i32
    return %c0_i32, %c0_i32_0 : i32, i32
  }
  func.func @transform_2(%arg0: i32) -> (i32, i32) {
    %c0_i32 = arith.constant 0 : i32
    %c0_i32_0 = arith.constant 0 : i32
    return %arg0, %c0_i32 : i32, i32
  }
  func.func @transform_3(%arg0: i32) -> (i32, i32, i32) {
    %c0_i32 = arith.constant 0 : i32
    %c0_i32_0 = arith.constant 0 : i32
    %c0_i32_1 = arith.constant 0 : i32
    return %arg0, %c0_i32, %c0_i32_0 : i32, i32, i32
  }
  func.func @transform_4(%arg0: i32) -> (i32, i32, i32) {
    %c0_i32 = arith.constant 0 : i32
    %c0_i32_0 = arith.constant 0 : i32
    %c0_i32_1 = arith.constant 0 : i32
    return %arg0, %c0_i32, %c0_i32_0 : i32, i32, i32
  }
}

module attributes {stable_mosaic.version = 11 : i64} {
  func.func @affine_act_kernel(%arg0: i32, %arg1: memref<16x128xf32, #tpu.memory_space<vmem>>, %arg2: memref<1x128xf32, #tpu.memory_space<vmem>>, %arg3: memref<1x128xf32, #tpu.memory_space<vmem>>, %arg4: memref<16x128xbf16, #tpu.memory_space<vmem>>) attributes {dimension_semantics = [#tpu.dimension_semantics<parallel>], iteration_bounds = array<i64: 2>, scalar_prefetch = 0 : i64, scratch_operands = 0 : i64, tpu.core_type = #tpu.core_type<tc>, window_params = [{transform_indices = @transform_0, window_bounds = array<i64: 16, 128>}, {pipeline_mode = #tpu.pipeline_mode<synchronous>, transform_indices = @transform_1, window_bounds = array<i64: 1, 128>}, {pipeline_mode = #tpu.pipeline_mode<synchronous>, transform_indices = @transform_2, window_bounds = array<i64: 1, 128>}, {transform_indices = @transform_3, window_bounds = array<i64: 16, 128>}]} {
    %c0 = arith.constant 0 : index
    %c0_0 = arith.constant 0 : index
    %0 = vector.load %arg1[%c0, %c0_0] : memref<16x128xf32, #tpu.memory_space<vmem>>, vector<16x128xf32>
    %c0_1 = arith.constant 0 : index
    %c0_2 = arith.constant 0 : index
    %1 = vector.load %arg2[%c0_1, %c0_2] : memref<1x128xf32, #tpu.memory_space<vmem>>, vector<1x128xf32>
    %2 = vector.broadcast %1 : vector<1x128xf32> to vector<16x128xf32>
    %3 = arith.mulf %0, %2 : vector<16x128xf32>
    %c0_3 = arith.constant 0 : index
    %c0_4 = arith.constant 0 : index
    %4 = vector.load %arg3[%c0_3, %c0_4] : memref<1x128xf32, #tpu.memory_space<vmem>>, vector<1x128xf32>
    %5 = vector.broadcast %4 : vector<1x128xf32> to vector<16x128xf32>
    %6 = arith.addf %3, %5 : vector<16x128xf32>
    %cst = arith.constant 0.000000e+00 : f32
    %7 = vector.broadcast %cst : f32 to vector<16x128xf32>
    %8 = arith.cmpf oge, %6, %7 : vector<16x128xf32>
    %cst_5 = arith.constant 2.000000e-01 : f32
    %9 = vector.broadcast %cst_5 : f32 to vector<16x128xf32>
    %10 = arith.mulf %9, %6 : vector<16x128xf32>
    %11 = arith.select %8, %6, %10 : vector<16x128xi1>, vector<16x128xf32>
    %12 = arith.truncf %11 : vector<16x128xf32> to vector<16x128xbf16>
    %c0_6 = arith.constant 0 : index
    %c0_7 = arith.constant 0 : index
    %13 = vector.load %arg4[%c0_6, %c0_7] : memref<16x128xbf16, #tpu.memory_space<vmem>>, vector<16x128xbf16>
    tpu.vector_store %arg4[%c0_6, %c0_7], %12 {strides = array<i32>} : memref<16x128xbf16, #tpu.memory_space<vmem>>, vector<16x128xbf16>,
    return
  }
  func.func @transform_0(%arg0: i32) -> (i32, i32) {
    %c0_i32 = arith.constant 0 : i32
    %c0_i32_0 = arith.constant 0 : i32
    return %arg0, %c0_i32 : i32, i32
  }
  func.func @transform_1(%arg0: i32) -> (i32, i32) {
    %c0_i32 = arith.constant 0 : i32
    %c0_i32_0 = arith.constant 0 : i32
    %c0_i32_1 = arith.constant 0 : i32
    return %c0_i32, %c0_i32_0 : i32, i32
  }
  func.func @transform_2(%arg0: i32) -> (i32, i32) {
    %c0_i32 = arith.constant 0 : i32
    %c0_i32_0 = arith.constant 0 : i32
    %c0_i32_1 = arith.constant 0 : i32
    return %c0_i32, %c0_i32_0 : i32, i32
  }
  func.func @transform_3(%arg0: i32) -> (i32, i32) {
    %c0_i32 = arith.constant 0 : i32
    %c0_i32_0 = arith.constant 0 : i32
    return %arg0, %c0_i32 : i32, i32
  }
}

module attributes {stable_mosaic.version = 11 : i64} {
  func.func @matmul_stats_kernel(%arg0: i32, %arg1: memref<16x512xbf16, #tpu.memory_space<vmem>>, %arg2: memref<512x128xbf16, #tpu.memory_space<vmem>>, %arg3: memref<16x128xf32, #tpu.memory_space<vmem>>, %arg4: memref<1x8x128xf32, #tpu.memory_space<vmem>>, %arg5: memref<1x8x128xf32, #tpu.memory_space<vmem>>) attributes {dimension_semantics = [#tpu.dimension_semantics<parallel>], iteration_bounds = array<i64: 2>, scalar_prefetch = 0 : i64, scratch_operands = 0 : i64, tpu.core_type = #tpu.core_type<tc>, window_params = [{transform_indices = @transform_0, window_bounds = array<i64: 16, 512>}, {pipeline_mode = #tpu.pipeline_mode<synchronous>, transform_indices = @transform_1, window_bounds = array<i64: 512, 128>}, {transform_indices = @transform_2, window_bounds = array<i64: 16, 128>}, {transform_indices = @transform_3, window_bounds = array<i64: 1, 8, 128>}, {transform_indices = @transform_4, window_bounds = array<i64: 1, 8, 128>}]} {
    %c0 = arith.constant 0 : index
    %c0_0 = arith.constant 0 : index
    %0 = vector.load %arg1[%c0, %c0_0] : memref<16x512xbf16, #tpu.memory_space<vmem>>, vector<16x512xbf16>
    %c0_1 = arith.constant 0 : index
    %c0_2 = arith.constant 0 : index
    %1 = vector.load %arg2[%c0_1, %c0_2] : memref<512x128xbf16, #tpu.memory_space<vmem>>, vector<512x128xbf16>
    %cst = arith.constant dense<0.000000e+00> : vector<16x128xf32>
    %2 = tpu.matmul %0, %1, %cst {dimension_numbers = #tpu.dot_dimension_numbers<[1], [0], [0], [1], [0, 0, 1, 1], [], []>} : vector<16x512xbf16>, vector<512x128xbf16>, vector<16x128xf32> -> vector<16x128xf32>
    %c16_i32 = arith.constant 16 : i32
    %3 = arith.muli %arg0, %c16_i32 : i32
    %4 = tpu.iota {dimensions = array<i32: 0>} : vector<16x128xi32>
    %5 = vector.broadcast %3 : i32 to vector<16x128xi32>
    %6 = arith.addi %5, %4 : vector<16x128xi32>
    %c32_i32 = arith.constant 32 : i32
    %7 = vector.broadcast %c32_i32 : i32 to vector<16x128xi32>
    %8 = arith.cmpi slt, %6, %7 : vector<16x128xi32>
    %cst_3 = arith.constant 0.000000e+00 : f32
    %9 = vector.broadcast %cst_3 : f32 to vector<16x128xf32>
    %10 = arith.select %8, %2, %9 : vector<16x128xi1>, vector<16x128xf32>
    %c0_4 = arith.constant 0 : index
    %c0_5 = arith.constant 0 : index
    %11 = vector.load %arg3[%c0_4, %c0_5] : memref<16x128xf32, #tpu.memory_space<vmem>>, vector<16x128xf32>
    tpu.vector_store %arg3[%c0_4, %c0_5], %2 {strides = array<i32>} : memref<16x128xf32, #tpu.memory_space<vmem>>, vector<16x128xf32>,
    %cst_6 = arith.constant dense<0.000000e+00> : vector<128xf32>
    %12 = vector.multi_reduction <add>, %10, %cst_6 [0] : vector<16x128xf32> to vector<128xf32>
    %13 = vector.shape_cast %12 : vector<128xf32> to vector<1x128xf32>
    %14 = arith.mulf %10, %10 : vector<16x128xf32>
    %cst_7 = arith.constant dense<0.000000e+00> : vector<128xf32>
    %15 = vector.multi_reduction <add>, %14, %cst_7 [0] : vector<16x128xf32> to vector<128xf32>
    %16 = vector.shape_cast %15 : vector<128xf32> to vector<1x128xf32>
    %17 = vector.shape_cast %13 : vector<1x128xf32> to vector<1x1x128xf32>
    %18 = vector.shape_cast %17 : vector<1x1x128xf32> to vector<1x1x128xf32>
    %19 = vector.broadcast %18 : vector<1x1x128xf32> to vector<1x8x128xf32>
    %c0_8 = arith.constant 0 : index
    %c0_9 = arith.constant 0 : index
    %c0_10 = arith.constant 0 : index
    %20 = vector.load %arg4[%c0_8, %c0_9, %c0_10] : memref<1x8x128xf32, #tpu.memory_space<vmem>>, vector<1x8x128xf32>
    tpu.vector_store %arg4[%c0_8, %c0_9, %c0_10], %19 {strides = array<i32>} : memref<1x8x128xf32, #tpu.memory_space<vmem>>, vector<1x8x128xf32>,
    %21 = vector.shape_cast %16 : vector<1x128xf32> to vector<1x1x128xf32>
    %22 = vector.shape_cast %21 : vector<1x1x128xf32> to vector<1x1x128xf32>
    %23 = vector.broadcast %22 : vector<1x1x128xf32> to vector<1x8x128xf32>
    %c0_11 = arith.constant 0 : index
    %c0_12 = arith.constant 0 : index
    %c0_13 = arith.constant 0 : index
    %24 = vector.load %arg5[%c0_11, %c0_12, %c0_13] : memref<1x8x128xf32, #tpu.memory_space<vmem>>, vector<1x8x128xf32>
    tpu.vector_store %arg5[%c0_11, %c0_12, %c0_13], %23 {strides = array<i32>} : memref<1x8x128xf32, #tpu.memory_space<vmem>>, vector<1x8x128xf32>,
    return
  }
  func.func @transform_0(%arg0: i32) -> (i32, i32) {
    %c0_i32 = arith.constant 0 : i32
    %c0_i32_0 = arith.constant 0 : i32
    return %arg0, %c0_i32 : i32, i32
  }
  func.func @transform_1(%arg0: i32) -> (i32, i32) {
    %c0_i32 = arith.constant 0 : i32
    %c0_i32_0 = arith.constant 0 : i32
    %c0_i32_1 = arith.constant 0 : i32
    return %c0_i32, %c0_i32_0 : i32, i32
  }
  func.func @transform_2(%arg0: i32) -> (i32, i32) {
    %c0_i32 = arith.constant 0 : i32
    %c0_i32_0 = arith.constant 0 : i32
    return %arg0, %c0_i32 : i32, i32
  }
  func.func @transform_3(%arg0: i32) -> (i32, i32, i32) {
    %c0_i32 = arith.constant 0 : i32
    %c0_i32_0 = arith.constant 0 : i32
    %c0_i32_1 = arith.constant 0 : i32
    return %arg0, %c0_i32, %c0_i32_0 : i32, i32, i32
  }
  func.func @transform_4(%arg0: i32) -> (i32, i32, i32) {
    %c0_i32 = arith.constant 0 : i32
    %c0_i32_0 = arith.constant 0 : i32
    %c0_i32_1 = arith.constant 0 : i32
    return %arg0, %c0_i32, %c0_i32_0 : i32, i32, i32
  }
}

module attributes {stable_mosaic.version = 11 : i64} {
  func.func @matmul_affine_act_kernel(%arg0: i32, %arg1: memref<32x1024xbf16, #tpu.memory_space<vmem>>, %arg2: memref<1024x128xbf16, #tpu.memory_space<vmem>>, %arg3: memref<1x128xf32, #tpu.memory_space<vmem>>, %arg4: memref<1x128xf32, #tpu.memory_space<vmem>>, %arg5: memref<32x128xf32, #tpu.memory_space<vmem>>) attributes {dimension_semantics = [#tpu.dimension_semantics<parallel>], iteration_bounds = array<i64: 2>, scalar_prefetch = 0 : i64, scratch_operands = 0 : i64, tpu.core_type = #tpu.core_type<tc>, window_params = [{transform_indices = @transform_0, window_bounds = array<i64: 32, 1024>}, {pipeline_mode = #tpu.pipeline_mode<synchronous>, transform_indices = @transform_1, window_bounds = array<i64: 1024, 128>}, {pipeline_mode = #tpu.pipeline_mode<synchronous>, transform_indices = @transform_2, window_bounds = array<i64: 1, 128>}, {pipeline_mode = #tpu.pipeline_mode<synchronous>, transform_indices = @transform_3, window_bounds = array<i64: 1, 128>}, {transform_indices = @transform_4, window_bounds = array<i64: 32, 128>}]} {
    %c0 = arith.constant 0 : index
    %c0_0 = arith.constant 0 : index
    %0 = vector.load %arg1[%c0, %c0_0] : memref<32x1024xbf16, #tpu.memory_space<vmem>>, vector<32x1024xbf16>
    %c0_1 = arith.constant 0 : index
    %c0_2 = arith.constant 0 : index
    %1 = vector.load %arg2[%c0_1, %c0_2] : memref<1024x128xbf16, #tpu.memory_space<vmem>>, vector<1024x128xbf16>
    %cst = arith.constant dense<0.000000e+00> : vector<32x128xf32>
    %2 = tpu.matmul %0, %1, %cst {dimension_numbers = #tpu.dot_dimension_numbers<[1], [0], [0], [1], [0, 0, 1, 1], [], []>} : vector<32x1024xbf16>, vector<1024x128xbf16>, vector<32x128xf32> -> vector<32x128xf32>
    %c0_3 = arith.constant 0 : index
    %c0_4 = arith.constant 0 : index
    %3 = vector.load %arg3[%c0_3, %c0_4] : memref<1x128xf32, #tpu.memory_space<vmem>>, vector<1x128xf32>
    %4 = vector.broadcast %3 : vector<1x128xf32> to vector<32x128xf32>
    %5 = arith.mulf %2, %4 : vector<32x128xf32>
    %c0_5 = arith.constant 0 : index
    %c0_6 = arith.constant 0 : index
    %6 = vector.load %arg4[%c0_5, %c0_6] : memref<1x128xf32, #tpu.memory_space<vmem>>, vector<1x128xf32>
    %7 = vector.broadcast %6 : vector<1x128xf32> to vector<32x128xf32>
    %8 = arith.addf %5, %7 : vector<32x128xf32>
    %c0_7 = arith.constant 0 : index
    %c0_8 = arith.constant 0 : index
    %9 = vector.load %arg5[%c0_7, %c0_8] : memref<32x128xf32, #tpu.memory_space<vmem>>, vector<32x128xf32>
    tpu.vector_store %arg5[%c0_7, %c0_8], %8 {strides = array<i32>} : memref<32x128xf32, #tpu.memory_space<vmem>>, vector<32x128xf32>,
    return
  }
  func.func @transform_0(%arg0: i32) -> (i32, i32) {
    %c0_i32 = arith.constant 0 : i32
    %c0_i32_0 = arith.constant 0 : i32
    return %arg0, %c0_i32 : i32, i32
  }
  func.func @transform_1(%arg0: i32) -> (i32, i32) {
    %c0_i32 = arith.constant 0 : i32
    %c0_i32_0 = arith.constant 0 : i32
    %c0_i32_1 = arith.constant 0 : i32
    return %c0_i32, %c0_i32_0 : i32, i32
  }
  func.func @transform_2(%arg0: i32) -> (i32, i32) {
    %c0_i32 = arith.constant 0 : i32
    %c0_i32_0 = arith.constant 0 : i32
    %c0_i32_1 = arith.constant 0 : i32
    return %c0_i32, %c0_i32_0 : i32, i32
  }
  func.func @transform_3(%arg0: i32) -> (i32, i32) {
    %c0_i32 = arith.constant 0 : i32
    %c0_i32_0 = arith.constant 0 : i32
    %c0_i32_1 = arith.constant 0 : i32
    return %c0_i32, %c0_i32_0 : i32, i32
  }
  func.func @transform_4(%arg0: i32) -> (i32, i32) {
    %c0_i32 = arith.constant 0 : i32
    %c0_i32_0 = arith.constant 0 : i32
    return %arg0, %c0_i32 : i32, i32
  }
}

</mosaic_0001>

<bundles_post_ra>
// kernel: _lambda_.8
= control target key start
LH: loop header
LB: loop body
LE: loop exit
PB: predicated region body
PF: predicated region fallthrough
CT: control target
= control target key end

     0   :  { %s886_s15 = smov 0   ;;  %s996_s0 = inlined_call_operand.vmem [shape: bf16[256,128], index: 0, kind: input, shape index: {}]   ;;  %s997_s1 = inlined_call_operand.vmem [shape: bf16[128,128], index: 1, kind: input, shape index: {}]   ;;  %s998_s2 = inlined_call_operand.vmem [shape: f32[1,128], index: 2, kind: input, shape index: {}]   ;;  %s999_s3 = inlined_call_operand.vmem [shape: f32[1,128], index: 3, kind: input, shape index: {}]   ;;  %s1000_s4 = inlined_call_operand.vmem [shape: bf16[256,128], index: 4, kind: output, shape index: {}]  }
   0x1 LB: > { %s657_s16 = sadd.s32 4294967295, %s859_s15   ;;  %p661_p0 = scmp.ge.s32.totalorder %s859_s15, 1  ;;  %s859_s15 = sphi %s886_s15, %s14_s15  }
   0x2   : > { %p163_p1 = scmp.lt.s32.totalorder %s859_s15, 3 }
   0x4   : > { %p164_p2 = pnand %p661_p0, %p163_p1 }
   0x5   : > { %v837_v0 = vld [vmem:[%s997_s1] sm:$0xff] (!%p164_p2)   ;;  %s662_s19 = sshll.u32 (!%p164_p2), %s657_s16, 4  ;;  %v838_v1 = vld [vmem:[%s997_s1 + $0x8] sm:$0xff] (!%p164_p2)   ;;  %v839_v2 = vld [vmem:[%s997_s1 + $0x10] sm:$0xff] (!%p164_p2)  }
   0x6   : > { %167 = sbr.rel (%p164_p2) target bundleno = 277 (0x115), region = 36  ;;  %p190_p3 = scmp.lt.s32.totalorder (!%p164_p2), %s662_s19, 31  ;;  %781 = vmatprep.subr.bf16.mxu0 (!%p164_p2), %v837_v0  ;;  %813 = vmatprep.subr.bf16.mxu1 (!%p164_p2), %v837_v0  ;;  %v840_v3 = vld [vmem:[%s997_s1 + $0x18] sm:$0xff] (!%p164_p2)   ;;  %v841_v6 = vld [vmem:[%s997_s1 + $0x20] sm:$0xff] (!%p164_p2)   ;;  %v842_v7 = vld [vmem:[%s997_s1 + $0x28] sm:$0xff] (!%p164_p2)  }
   0x7   : > { %782 = vmatpush3.bf16.msra.mxu0 (!%p164_p2), %v837_v0  ;;  %821 = vmatpush3.bf16.msra.mxu1 (!%p164_p2), %v837_v0  ;;  %v843_v8 = vld [vmem:[%s997_s1 + $0x30] sm:$0xff] (!%p164_p2)   ;;  %v844_v9 = vld [vmem:[%s997_s1 + $0x38] sm:$0xff] (!%p164_p2)   ;;  %v939_v16 = vld [vmem:[%s998_s2] ss:$0 sm:$0xff] (!%p164_p2) }
   0x8   : > { %783 = vmatprep.subr.bf16.mxu0 (!%p164_p2), %v838_v1  ;;  %814 = vmatprep.subr.bf16.mxu1 (!%p164_p2), %v838_v1  ;;  %v944_v18 = vld [vmem:[%s999_s3] ss:$0 sm:$0xff] (!%p164_p2) }
   0xb   : > { %784 = vmatpush3.bf16.msra.mxu0 (!%p164_p2), %v838_v1  ;;  %822 = vmatpush3.bf16.msra.mxu1 (!%p164_p2), %v838_v1 }
   0xc   : > { %785 = vmatprep.subr.bf16.mxu0 (!%p164_p2), %v839_v2  ;;  %815 = vmatprep.subr.bf16.mxu1 (!%p164_p2), %v839_v2 }
   0xd   : > { %s1002_s19 = smov (!%p190_p3, %s662_s19), 31 }
   0xe   : > { %s663_s24 = sshll.u32 %s1002_s19, 2 }
   0xf   : > { %s911_s27 = scalar_lea.vmem %s996_s0, %s663_s24  ;;  %786 = vmatpush3.bf16.msra.mxu0 %v839_v2  ;;  %823 = vmatpush3.bf16.msra.mxu1 %v839_v2  ;;  %s967_s20 = scalar_lea.vmem %s1000_s4, %s663_s24 }
  0x10   : > { %v845_v4 = vld [vmem:[%s911_s27] sm:$0xff]   ;;  %787 = vmatprep.subr.bf16.mxu0 %v840_v3  ;;  %816 = vmatprep.subr.bf16.mxu1 %v840_v3  ;;  %v847_v10 = vld [vmem:[%s911_s27 + $0x8] sm:$0xff]   ;;  %v849_v12 = vld [vmem:[%s911_s27 + $0x10] sm:$0xff]  }
  0x11   : > { %v846_v5 = vld [vmem:[%s911_s27 + $0x20] sm:$0xff]   ;;  %797 = vmatprep.mubr.bf16.mxu0 %v845_v4  ;;  %v848_v11 = vld [vmem:[%s911_s27 + $0x28] sm:$0xff]   ;;  %v850_v13 = vld [vmem:[%s911_s27 + $0x30] sm:$0xff]  }
  0x12   : > { %805 = vmatprep.mubr.bf16.mxu1 %v846_v5  ;;  %v851_v14 = vld [vmem:[%s911_s27 + $0x18] sm:$0xff]  }
  0x13   : > { %788 = vmatpush3.bf16.msra.mxu0 %v840_v3  ;;  %824 = vmatpush3.bf16.msra.mxu1 %v840_v3  ;;  %v852_v15 = vld [vmem:[%s911_s27 + $0x38] sm:$0xff]  }
  0x14   : > { %789 = vmatprep.subr.bf16.mxu0 %v841_v6  ;;  %817 = vmatprep.subr.bf16.mxu1 %v841_v6 }
  0x17   : > { %790 = vmatpush3.bf16.msra.mxu0 %v841_v6  ;;  %825 = vmatpush3.bf16.msra.mxu1 %v841_v6 }
  0x18   : > { %791 = vmatprep.subr.bf16.mxu0 %v842_v7  ;;  %818 = vmatprep.subr.bf16.mxu1 %v842_v7 }
  0x1b   : > { %792 = vmatpush3.bf16.msra.mxu0 %v842_v7  ;;  %826 = vmatpush3.bf16.msra.mxu1 %v842_v7 }
  0x1c   : > { %793 = vmatprep.subr.bf16.mxu0 %v843_v8  ;;  %819 = vmatprep.subr.bf16.mxu1 %v843_v8 }
  0x1f   : > { %794 = vmatpush3.bf16.msra.mxu0 %v843_v8  ;;  %827 = vmatpush3.bf16.msra.mxu1 %v843_v8 }
  0x20   : > { %795 = vmatprep.subr.bf16.mxu0 %v844_v9  ;;  %820 = vmatprep.subr.bf16.mxu1 %v844_v9 }
  0x23   : > { %796 = vmatpush3.bf16.msra.mxu0 %v844_v9  ;;  %828 = vmatpush3.bf16.msra.mxu1 %v844_v9 }
  0x26   : > { %798 = vmatmul.mubr.bf16.vlgmr.msra.gmra.mrb[0].mxu0 %v847_v10  ;;  %806 = vmatmul.mubr.bf16.vlgmr.msra.gmra.mrb[0].mxu1 %v848_v11 }
  0x27   : > { %801 = vmatprep.mubr.bf16.mxu0 %v849_v12  ;;  %809 = vmatprep.mubr.bf16.mxu1 %v850_v13 }
  0x2e   : > { %802 = vmatmul.mubr.bf16.gmra.mrb[4].mxu0 %v851_v14  ;;  %810 = vmatmul.mubr.bf16.gmra.mrb[4].mxu1 %v852_v15 }
  0xf9   : > { %v799_v17 = vpop.f32.mrb[0].mxu0  ;;  %v807_v19 = vpop.f32.mrb[0].mxu1 }
  0xfa   : > { %v436_v20 = vmul.f32 %v799_v17, %v939_v16  ;;  %v444_v21 = vmul.f32 %v807_v19, %v939_v16  ;;  %v364_v22 = vpop.f32.mrb[1].mxu0  ;;  %v396_v23 = vpop.f32.mrb[1].mxu1 }
  0xfb   : > { %v434_v24 = vmul.f32 %v939_v16, %v364_v22  ;;  %v442_v25 = vmul.f32 %v939_v16, %v396_v23  ;;  %v800_v26 = vpop.f32.mrb[2].mxu0  ;;  %v808_v27 = vpop.f32.mrb[2].mxu1 }
  0xfc   : > { %v459_v28 = vadd.f32 %v944_v18, %v436_v20  ;;  %v467_v29 = vadd.f32 %v944_v18, %v444_v21  ;;  %v437_v30 = vmul.f32 %v800_v26, %v939_v16  ;;  %v445_v31 = vmul.f32 %v808_v27, %v939_v16  ;;  %v367_v32 = vpop.f32.mrb[3].mxu0  ;;  %v399_v33 = vpop.f32.mrb[3].mxu1 }
  0xfd   : > { %v457_v34 = vadd.f32 %v944_v18, %v434_v24  ;;  %v465_v35 = vadd.f32 %v944_v18, %v442_v25  ;;  %v435_v36 = vmul.f32 %v939_v16, %v367_v32  ;;  %v443_v37 = vmul.f32 %v939_v16, %v399_v33 }
  0xfe   : > { %vm475_vm0 = vcmp.ge.f32.partialorder %v459_v28, 0.0  ;;  %v491_v38 = vmul.f32 0.2, %v459_v28  ;;  %vm483_vm1 = vcmp.ge.f32.partialorder %v467_v29, 0.0  ;;  %v499_v39 = vmul.f32 0.2, %v467_v29 }
  0xff   : > { %vm473_vm2 = vcmp.ge.f32.partialorder %v457_v34, 0.0  ;;  %v489_v40 = vmul.f32 0.2, %v457_v34  ;;  %vm481_vm3 = vcmp.ge.f32.partialorder %v465_v35, 0.0  ;;  %v497_v41 = vmul.f32 0.2, %v465_v35 }
 0x100   : > { %v507_v42 = vsel %vm475_vm0, %v459_v28, %v491_v38  ;;  %v515_v43 = vsel %vm483_vm1, %v467_v29, %v499_v39  ;;  %v460_v44 = vadd.f32 %v944_v18, %v437_v30  ;;  %v468_v45 = vadd.f32 %v944_v18, %v445_v31 }
 0x101   : > { %v505_v46 = vsel %vm473_vm2, %v457_v34, %v489_v40  ;;  %v513_v47 = vsel %vm481_vm3, %v465_v35, %v497_v41  ;;  %v458_v48 = vadd.f32 %v944_v18, %v435_v36  ;;  %v466_v49 = vadd.f32 %v944_v18, %v443_v37  ;;  %v803_v50 = vpop.f32.mrb[4].mxu0  ;;  %v811_v51 = vpop.f32.mrb[4].mxu1 }
 0x102   : > { %vm476_vm4 = vcmp.ge.f32.partialorder %v460_v44, 0.0  ;;  %v492_v52 = vmul.f32 0.2, %v460_v44  ;;  %vm484_vm5 = vcmp.ge.f32.partialorder %v468_v45, 0.0  ;;  %v500_v53 = vmul.f32 0.2, %v468_v45 }
 0x103   : > { %vm474_vm6 = vcmp.ge.f32.partialorder %v458_v48, 0.0  ;;  %v490_v54 = vmul.f32 0.2, %v458_v48  ;;  %vm482_vm7 = vcmp.ge.f32.partialorder %v466_v49, 0.0  ;;  %v498_v55 = vmul.f32 0.2, %v466_v49 }
 0x104   : > { %v508_v56 = vsel %vm476_vm4, %v460_v44, %v492_v52  ;;  %v516_v57 = vsel %vm484_vm5, %v468_v45, %v500_v53  ;;  %v440_v58 = vmul.f32 %v803_v50, %v939_v16  ;;  %v448_v59 = vmul.f32 %v811_v51, %v939_v16  ;;  %v380_v60 = vpop.f32.mrb[5].mxu0  ;;  %v412_v61 = vpop.f32.mrb[5].mxu1 }
 0x105   : > { %v726_v62 = vpack.c.bf16 %v508_v56, %v507_v42  ;;  %v746_v63 = vpack.c.bf16 %v516_v57, %v515_v43  ;;  %v506_v0 = vsel %vm474_vm6, %v458_v48, %v490_v54  ;;  %v514_v1 = vsel %vm482_vm7, %v466_v49, %v498_v55  ;;  %v804_v2 = vpop.f32.mrb[6].mxu0  ;;  %v812_v3 = vpop.f32.mrb[6].mxu1 }
 0x106   : > { %v721_v4 = vpack.c.bf16 %v506_v0, %v505_v46  ;;  %v741_v5 = vpack.c.bf16 %v514_v1, %v513_v47  ;;  %v463_v6 = vadd.f32 %v944_v18, %v440_v58  ;;  %v471_v7 = vadd.f32 %v944_v18, %v448_v59  ;;  %v383_v8 = vpop.f32.mrb[7].mxu0  ;;  %v415_v9 = vpop.f32.mrb[7].mxu1 }
 0x107   : > { %758 = vst [vmem:[%s967_s20 + $0x8] sm:$0xff] %v726_v62   ;;  %762 = vst [vmem:[%s967_s20 + $0x28] sm:$0xff] %v746_v63   ;;  %v438_v10 = vmul.f32 %v939_v16, %v380_v60  ;;  %v446_v11 = vmul.f32 %v939_v16, %v412_v61  ;;  %v441_v12 = vmul.f32 %v804_v2, %v939_v16 }
 0x108   : > { %v449_v13 = vmul.f32 %v812_v3, %v939_v16  ;;  %722 = vst [vmem:[%s967_s20] sm:$0xff] %v721_v4   ;;  %761 = vst [vmem:[%s967_s20 + $0x20] sm:$0xff] %v741_v5   ;;  %vm479_vm8 = vcmp.ge.f32.partialorder %v463_v6, 0.0  ;;  %v495_v14 = vmul.f32 0.2, %v463_v6  ;;  %vm487_vm9 = vcmp.ge.f32.partialorder %v471_v7, 0.0 }
 0x109   : > { %v503_v15 = vmul.f32 0.2, %v471_v7  ;;  %v461_v17 = vadd.f32 %v944_v18, %v438_v10  ;;  %v464_v19 = vadd.f32 %v944_v18, %v441_v12  ;;  %v469_v21 = vadd.f32 %v944_v18, %v446_v11 }
 0x10a   : > { %v472_v20 = vadd.f32 %v944_v18, %v449_v13  ;;  %v439_v22 = vmul.f32 %v939_v16, %v383_v8  ;;  %v447_v23 = vmul.f32 %v939_v16, %v415_v9  ;;  %v511_v24 = vsel %vm479_vm8, %v463_v6, %v495_v14 }
 0x10b   : > { %v519_v25 = vsel %vm487_vm9, %v471_v7, %v503_v15  ;;  %vm480_vm10 = vcmp.ge.f32.partialorder %v464_v19, 0.0  ;;  %v496_v26 = vmul.f32 0.2, %v464_v19  ;;  %vm477_vm12 = vcmp.ge.f32.partialorder %v461_v17, 0.0 }
 0x10c   : > { %vm488_vm11 = vcmp.ge.f32.partialorder %v472_v20, 0.0  ;;  %v504_v27 = vmul.f32 0.2, %v472_v20  ;;  %v493_v28 = vmul.f32 0.2, %v461_v17  ;;  %v462_v29 = vadd.f32 %v944_v18, %v439_v22 }
 0x10d   : > { %v470_v30 = vadd.f32 %v944_v18, %v447_v23  ;;  %vm485_vm13 = vcmp.ge.f32.partialorder %v469_v21, 0.0  ;;  %v501_v31 = vmul.f32 0.2, %v469_v21  ;;  %v512_v32 = vsel %vm480_vm10, %v464_v19, %v496_v26 }
 0x10e   : > { %v520_v33 = vsel %vm488_vm11, %v472_v20, %v504_v27  ;;  %v736_v16 = vpack.c.bf16 %v512_v32, %v511_v24  ;;  %vm478_vm14 = vcmp.ge.f32.partialorder %v462_v29, 0.0  ;;  %v494_v35 = vmul.f32 0.2, %v462_v29 }
 0x10f   : > { %v756_v34 = vpack.c.bf16 %v520_v33, %v519_v25  ;;  %vm486_vm15 = vcmp.ge.f32.partialorder %v470_v30, 0.0  ;;  %v502_v36 = vmul.f32 0.2, %v470_v30  ;;  %v509_v37 = vsel %vm477_vm12, %v461_v17, %v493_v28 }
 0x110   : > { %760 = vst [vmem:[%s967_s20 + $0x18] sm:$0xff] %v736_v16   ;;  %v510_v38 = vsel %vm478_vm14, %v462_v29, %v494_v35  ;;  %v517_v39 = vsel %vm485_vm13, %v469_v21, %v501_v31 }
 0x111   : > { %764 = vst [vmem:[%s967_s20 + $0x38] sm:$0xff] %v756_v34   ;;  %v731_v40 = vpack.c.bf16 %v510_v38, %v509_v37  ;;  %v518_v41 = vsel %vm486_vm15, %v470_v30, %v502_v36 }
 0x112   : > { %v751_v18 = vpack.c.bf16 %v518_v41, %v517_v39 }
 0x113   : > { %759 = vst [vmem:[%s967_s20 + $0x10] sm:$0xff] %v731_v40  }
 0x114   : > { %763 = vst [vmem:[%s967_s20 + $0x30] sm:$0xff] %v751_v18  }
 0x115 PF: > { %s14_s15 = sadd.s32 1, %s859_s15  }
 0x116   : > { %p11_p4 = scmp.ge.s32.totalorder %s14_s15, 4  }
 0x118   :  { %13 = sbr.rel (!%p11_p4) target bundleno = 1 (0x1), region = 66 }

// kernel: _lambda_.10
= control target key start
LH: loop header
LB: loop body
LE: loop exit
PB: predicated region body
PF: predicated region fallthrough
CT: control target
= control target key end

     0   :  { %s356_s12 = smov 0   ;;  %s379_s0 = inlined_call_operand.vmem [shape: f32[64,128], index: 0, kind: input, shape index: {}]   ;;  %s380_s1 = inlined_call_operand.vmem [shape: f32[1,128], index: 1, kind: input, shape index: {}]   ;;  %s381_s2 = inlined_call_operand.vmem [shape: f32[1,128], index: 2, kind: input, shape index: {}]   ;;  %s382_s3 = inlined_call_operand.vmem [shape: bf16[64,128], index: 3, kind: output, shape index: {}]  }
   0x1 LB: > { %s288_s13 = sadd.s32 4294967295, %s334_s12   ;;  %p292_p0 = scmp.ge.s32.totalorder %s334_s12, 1  ;;  %s334_s12 = sphi %s356_s12, %s13_s12  }
   0x2   : > { %p138_p1 = scmp.lt.s32.totalorder %s334_s12, 3 }
   0x4   : > { %p139_p2 = pnand %p292_p0, %p138_p1 }
   0x5   : > { %s293_s14 = sshll.u32 (!%p139_p2), %s288_s13, 2  ;;  %v297_v0 = vld [vmem:[%s380_s1] ss:$0 sm:$0xff] (!%p139_p2) }
   0x6   : > { %142 = sbr.rel (%p139_p2) target bundleno = 28 (0x1c), region = 32  ;;  %p163_p3 = scmp.lt.s32.totalorder (!%p139_p2), %s293_s14, 7  ;;  %v298_v1 = vld [vmem:[%s381_s2] ss:$0 sm:$0xff] (!%p139_p2) }
   0xd   : > { %s384_s14 = smov (!%p163_p3, %s293_s14), 7 }
   0xe   : > { %s294_s15 = sshll.u32 %s384_s14, 3  ;;  %s296_s23 = sshll.u32 %s384_s14, 2 }
   0xf   : > { %s166_s20 = scalar_lea.vmem %s379_s0, %s294_s15  ;;  %s172_s26 = scalar_lea.vmem %s382_s3, %s296_s23 }
  0x10   : > { %v174_v2 = vld [vmem:[%s166_s20] sm:$0xff]  ;;  %v175_v3 = vld [vmem:[%s166_s20 + $0x8] sm:$0xff]  ;;  %v176_v4 = vld [vmem:[%s166_s20 + $0x10] sm:$0xff] }
  0x11   : > { %v177_v5 = vld [vmem:[%s166_s20 + $0x18] sm:$0xff]  ;;  %v185_v6 = vmul.f32 %v297_v0, %v174_v2  ;;  %v186_v7 = vmul.f32 %v297_v0, %v175_v3  ;;  %v187_v8 = vmul.f32 %v297_v0, %v176_v4 }
  0x12   : > { %v188_v9 = vmul.f32 %v297_v0, %v177_v5 }
  0x13   : > { %v196_v10 = vadd.f32 %v298_v1, %v185_v6  ;;  %v197_v11 = vadd.f32 %v298_v1, %v186_v7  ;;  %v198_v12 = vadd.f32 %v298_v1, %v187_v8 }
  0x14   : > { %v199_v13 = vadd.f32 %v298_v1, %v188_v9 }
  0x15   : > { %vm200_vm0 = vcmp.ge.f32.partialorder %v196_v10, 0.0  ;;  %vm201_vm1 = vcmp.ge.f32.partialorder %v197_v11, 0.0  ;;  %v204_v14 = vmul.f32 0.2, %v196_v10  ;;  %v205_v15 = vmul.f32 0.2, %v197_v11 }
  0x16   : > { %vm202_vm2 = vcmp.ge.f32.partialorder %v198_v12, 0.0  ;;  %vm203_vm3 = vcmp.ge.f32.partialorder %v199_v13, 0.0  ;;  %v206_v16 = vmul.f32 0.2, %v198_v12  ;;  %v207_v17 = vmul.f32 0.2, %v199_v13 }
  0x17   : > { %v208_v18 = vsel %vm200_vm0, %v196_v10, %v204_v14  ;;  %v209_v19 = vsel %vm201_vm1, %v197_v11, %v205_v15 }
  0x18   : > { %v312_v20 = vpack.c.bf16 %v209_v19, %v208_v18  ;;  %v210_v21 = vsel %vm202_vm2, %v198_v12, %v206_v16  ;;  %v211_v22 = vsel %vm203_vm3, %v199_v13, %v207_v17 }
  0x19   : > { %v317_v23 = vpack.c.bf16 %v211_v22, %v210_v21 }
  0x1a   : > { %313 = vst [vmem:[%s172_s26] sm:$0xff] %v312_v20  }
  0x1b   : > { %319 = vst [vmem:[%s172_s26 + $0x8] sm:$0xff] %v317_v23  }
  0x1c PF: > { %s13_s12 = sadd.s32 1, %s334_s12  }
  0x1d   : > { %p10_p4 = scmp.ge.s32.totalorder %s13_s12, 4  }
  0x1f   :  { %12 = sbr.rel (!%p10_p4) target bundleno = 1 (0x1), region = 62 }

// kernel: _lambda_.9
= control target key start
LH: loop header
LB: loop body
LE: loop exit
PB: predicated region body
PF: predicated region fallthrough
CT: control target
= control target key end

     0   :  { %s622_s15 = smov 0   ;;  %s679_s0 = inlined_call_operand.vmem [shape: bf16[64,128], index: 0, kind: input, shape index: {}]   ;;  %s680_s1 = inlined_call_operand.vmem [shape: bf16[128,128], index: 1, kind: input, shape index: {}]   ;;  %s681_s2 = inlined_call_operand.vmem [shape: f32[64,128], index: 2, kind: output, shape index: {0}]   ;;  %s682_s3 = inlined_call_operand.vmem [shape: f32[2,8,128], index: 3, kind: output, shape index: {1}]   ;;  %s683_s4 = inlined_call_operand.vmem [shape: f32[2,8,128], index: 4, kind: output, shape index: {2}]  }
   0x1 LB: > { %s628_s16 = sadd.s32 4294967295, %s595_s15   ;;  %p521_p0 = scmp.ge.s32.totalorder %s595_s15, 1  ;;  %s595_s15 = sphi %s622_s15, %s15_s15  }
   0x2   : > { %p168_p1 = scmp.lt.s32.totalorder %s595_s15, 3 }
   0x4   : > { %p169_p2 = pnand %p521_p0, %p168_p1 }
   0x5   : > { %v579_v0 = vld [vmem:[%s680_s1] sm:$0xff] (!%p169_p2)   ;;  %s522_s19 = sshll.u32 (!%p169_p2), %s628_s16, 2  ;;  %v580_v1 = vld [vmem:[%s680_s1 + $0x8] sm:$0xff] (!%p169_p2)   ;;  %v581_v2 = vld [vmem:[%s680_s1 + $0x10] sm:$0xff] (!%p169_p2)   ;;  %v353_v10 = vlaneseq (!%p169_p2)  ;;  %s538_s12 = sshll.u32 (!%p169_p2), %s628_s16, 5 }
   0x6   : > { %172 = sbr.rel (%p169_p2) target bundleno = 275 (0x113), region = 28  ;;  %p203_p3 = scmp.lt.s32.totalorder (!%p169_p2), %s522_s19, 7  ;;  %551 = vmatprep.subr.bf16.mxu0 (!%p169_p2), %v579_v0  ;;  %v582_v3 = vld [vmem:[%s680_s1 + $0x18] sm:$0xff] (!%p169_p2)   ;;  %v583_v5 = vld [vmem:[%s680_s1 + $0x20] sm:$0xff] (!%p169_p2)   ;;  %v584_v6 = vld [vmem:[%s680_s1 + $0x28] sm:$0xff] (!%p169_p2)   ;;  %v358_v12 = vstv (!%p169_p2), %s538_s12 }
   0x7   : > { %552 = vmatpush3.bf16.msra.mxu0 (!%p169_p2), %v579_v0  ;;  %v585_v7 = vld [vmem:[%s680_s1 + $0x30] sm:$0xff] (!%p169_p2)   ;;  %v586_v8 = vld [vmem:[%s680_s1 + $0x38] sm:$0xff] (!%p169_p2)   ;;  %v354_v11 = vshrl.u32 (!%p169_p2), %v353_v10, 7  ;;  %p214_p4 = scmp.lt.s32.totalorder (!%p169_p2), %s628_s16, 1 }
   0x8   : > { %553 = vmatprep.subr.bf16.mxu0 (!%p169_p2), %v580_v1 }
   0x9   : > { %v356_v13 = vadd.s32 (!%p169_p2), 16, %v354_v11  ;;  %v355_v14 = vadd.s32 (!%p169_p2), 8, %v354_v11  ;;  %v359_v15 = vadd.s32 (!%p169_p2), %v358_v12, %v354_v11  ;;  %v357_v16 = vadd.s32 (!%p169_p2), 24, %v354_v11 }
   0xb   : > { %554 = vmatpush3.bf16.msra.mxu0 (!%p169_p2), %v580_v1  ;;  %v361_v17 = vadd.s32 (!%p169_p2), %v358_v12, %v356_v13  ;;  %v360_v18 = vadd.s32 (!%p169_p2), %v358_v12, %v355_v14  ;;  %vm363_vm0 = vcmp.lt.s32.totalorder (!%p169_p2), %v359_v15, 50  ;;  %v362_v19 = vadd.s32 (!%p169_p2), %v358_v12, %v357_v16 }
   0xc   : > { %555 = vmatprep.subr.bf16.mxu0 (!%p169_p2), %v581_v2 }
   0xd   : > { %s685_s19 = smov (!%p203_p3, %s522_s19), 7  ;;  %vm365_vm1 = vcmp.lt.s32.totalorder %v361_v17, 50  ;;  %vm364_vm2 = vcmp.lt.s32.totalorder %v360_v18, 50  ;;  %vm366_vm3 = vcmp.lt.s32.totalorder %v362_v19, 50  ;;  %s687_s16 = smov (!%p214_p4, %s628_s16), 1 }
   0xe   : > { %s523_s24 = sshll.u32 %s685_s19, 2  ;;  %s525_s13 = sshll.u32 %s685_s19, 3 }
   0xf   : > { %s206_s27 = scalar_lea.vmem %s679_s0, %s523_s24  ;;  %556 = vmatpush3.bf16.msra.mxu0 %v581_v2  ;;  %s212_s18 = scalar_lea.vmem %s681_s2, %s525_s13 }
  0x10   : > { %v587_v4 = vld [vmem:[%s206_s27] sm:$0xff]   ;;  %557 = vmatprep.subr.bf16.mxu0 %v582_v3  ;;  %v588_v9 = vld [vmem:[%s206_s27 + $0x8] sm:$0xff]   ;;  %s526_s19 = sshll.u32 %s687_s16, 3 }
  0x11   : > { %567 = vmatprep.mubr.bf16.mxu0 %v587_v4  ;;  %s217_s22 = scalar_lea.vmem %s682_s3, %s526_s19  ;;  %s221_s25 = scalar_lea.vmem %s683_s4, %s526_s19 }
  0x13   : > { %558 = vmatpush3.bf16.msra.mxu0 %v582_v3 }
  0x14   : > { %559 = vmatprep.subr.bf16.mxu0 %v583_v5 }
  0x17   : > { %560 = vmatpush3.bf16.msra.mxu0 %v583_v5 }
  0x18   : > { %561 = vmatprep.subr.bf16.mxu0 %v584_v6 }
  0x1b   : > { %562 = vmatpush3.bf16.msra.mxu0 %v584_v6 }
  0x1c   : > { %563 = vmatprep.subr.bf16.mxu0 %v585_v7 }
  0x1f   : > { %564 = vmatpush3.bf16.msra.mxu0 %v585_v7 }
  0x20   : > { %565 = vmatprep.subr.bf16.mxu0 %v586_v8 }
  0x23   : > { %566 = vmatpush3.bf16.msra.mxu0 %v586_v8 }
  0x26   : > { %568 = vmatmul.mubr.bf16.vlgmr.msra.gmra.mrb[0].mxu0 %v588_v9 }
  0xf9   : > { %v569_v20 = vpop.f32.mrb[0].mxu0 }
  0xfa   : > { %v337_v21 = vpop.f32.mrb[1].mxu0  ;;  %v369_v25 = vsel %vm365_vm1, %v569_v20, 0.0  ;;  %373 = vst [vmem:[%s212_s18 + $0x10] sm:$0xff] %v569_v20 }
  0xfb   : > { %v367_v22 = vsel %vm363_vm0, %v337_v21, 0.0  ;;  %371 = vst [vmem:[%s212_s18] sm:$0xff] %v337_v21  ;;  %v570_v23 = vpop.f32.mrb[2].mxu0  ;;  %v386_v31 = vmul.f32 %v369_v25, %v369_v25 }
  0xfc   : > { %v340_v24 = vpop.f32.mrb[3].mxu0  ;;  %v384_v27 = vmul.f32 %v367_v22, %v367_v22  ;;  %v370_v30 = vsel %vm366_vm3, %v570_v23, 0.0  ;;  %374 = vst [vmem:[%s212_s18 + $0x18] sm:$0xff] %v570_v23 }
  0xfd   : > { %v368_v26 = vsel %vm364_vm2, %v340_v24, 0.0  ;;  %372 = vst [vmem:[%s212_s18 + $0x8] sm:$0xff] %v340_v24  ;;  %v387_v34 = vmul.f32 %v370_v30, %v370_v30 }
  0xfe   : > { %v375_v28 = vadd.f32 %v368_v26, %v367_v22  ;;  %v385_v29 = vmul.f32 %v368_v26, %v368_v26 }
 0x100   : > { %v376_v32 = vadd.f32 %v375_v28, %v369_v25  ;;  %v388_v33 = vadd.f32 %v385_v29, %v384_v27 }
 0x102   : > { %v377_v35 = vadd.f32 %v376_v32, %v370_v30  ;;  %v389_v36 = vadd.f32 %v388_v33, %v386_v31 }
 0x104   : > { %v378_v37 = vrot.slane %v377_v35, 4  ;;  %v390_v38 = vadd.f32 %v389_v36, %v387_v34 }
 0x106   : > { %v379_v39 = vadd.f32 %v378_v37, %v377_v35  ;;  %v391_v40 = vrot.slane %v390_v38, 4 }
 0x108   : > { %v380_v41 = vrot.slane %v379_v39, 2  ;;  %v392_v42 = vadd.f32 %v391_v40, %v390_v38 }
 0x10a   : > { %v381_v43 = vadd.f32 %v380_v41, %v379_v39  ;;  %v393_v44 = vrot.slane %v392_v42, 2 }
 0x10c   : > { %v382_v45 = vrot.slane %v381_v43, 1  ;;  %v394_v46 = vadd.f32 %v393_v44, %v392_v42 }
 0x10e   : > { %v383_v47 = vadd.f32 %v382_v45, %v381_v43  ;;  %v395_v48 = vrot.slane %v394_v46, 1 }
 0x110   : > { %v396_v49 = vadd.f32 %v395_v48, %v394_v46  ;;  %397 = vst [vmem:[%s217_s22] sm:$0xff] %v383_v47 }
 0x112   : > { %398 = vst [vmem:[%s221_s25] sm:$0xff] %v396_v49 }
 0x113 PF: > { %s15_s15 = sadd.s32 1, %s595_s15  }
 0x114   : > { %p12_p5 = scmp.ge.s32.totalorder %s15_s15, 4  }
 0x116   :  { %14 = sbr.rel (!%p12_p5) target bundleno = 1 (0x1), region = 82 }

// kernel: _lambda_.11
= control target key start
LH: loop header
LB: loop body
LE: loop exit
PB: predicated region body
PF: predicated region fallthrough
CT: control target
= control target key end

     0   :  { %s672_s15 = smov 0   ;;  %s756_s0 = inlined_call_operand.vmem [shape: bf16[32,256], index: 0, kind: input, shape index: {}]   ;;  %s757_s1 = inlined_call_operand.vmem [shape: bf16[256,128], index: 1, kind: input, shape index: {}]   ;;  %s758_s2 = inlined_call_operand.vmem [shape: f32[32,128], index: 2, kind: output, shape index: {0}]   ;;  %s759_s3 = inlined_call_operand.vmem [shape: f32[2,8,128], index: 3, kind: output, shape index: {1}]   ;;  %s760_s4 = inlined_call_operand.vmem [shape: f32[2,8,128], index: 4, kind: output, shape index: {2}]  }
   0x1 LB: > { %s678_s16 = sadd.s32 4294967295, %s645_s15   ;;  %p560_p0 = scmp.ge.s32.totalorder %s645_s15, 1  ;;  %s645_s15 = sphi %s672_s15, %s15_s15  }
   0x2   : > { %p169_p1 = scmp.lt.s32.totalorder %s645_s15, 3 }
   0x4   : > { %p170_p2 = pnand %p560_p0, %p169_p1 }
   0x5   : > { %v620_v0 = vld [vmem:[%s757_s1 + $0x40] sm:$0xff] (!%p170_p2)   ;;  %s561_s19 = sshll.u32 (!%p170_p2), %s678_s16, 1  ;;  %v622_v2 = vld [vmem:[%s757_s1 + $0x48] sm:$0xff] (!%p170_p2)   ;;  %v624_v4 = vld [vmem:[%s757_s1 + $0x50] sm:$0xff] (!%p170_p2)   ;;  %v408_v18 = vlaneseq (!%p170_p2)  ;;  %s586_s5 = sshll.u32 (!%p170_p2), %s678_s16, 4 }
   0x6   : > { %173 = sbr.rel (%p170_p2) target bundleno = 273 (0x111), region = 28  ;;  %v621_v1 = vld [vmem:[%s757_s1] sm:$0xff] (!%p170_p2)   ;;  %590 = vmatprep.subr.bf16.mxu0 (!%p170_p2), %v620_v0  ;;  %v623_v3 = vld [vmem:[%s757_s1 + $0x8] sm:$0xff] (!%p170_p2)   ;;  %p205_p3 = scmp.lt.s32.totalorder (!%p170_p2), %s561_s19, 3  ;;  %v625_v5 = vld [vmem:[%s757_s1 + $0x10] sm:$0xff] (!%p170_p2)   ;;  %v411_v20 = vstv (!%p170_p2), %s586_s5 }
   0x7   : > { %591 = vmatpush3.bf16.msra.mxu0 (!%p170_p2), %v621_v1  ;;  %v626_v6 = vld [vmem:[%s757_s1 + $0x58] sm:$0xff] (!%p170_p2)   ;;  %v628_v8 = vld [vmem:[%s757_s1 + $0x60] sm:$0xff] (!%p170_p2)   ;;  %v630_v10 = vld [vmem:[%s757_s1 + $0x68] sm:$0xff] (!%p170_p2)   ;;  %v409_v19 = vshrl.u32 (!%p170_p2), %v408_v18, 7  ;;  %p217_p4 = scmp.lt.s32.totalorder (!%p170_p2), %s678_s16, 1 }
   0x8   : > { %592 = vmatprep.subr.bf16.mxu0 (!%p170_p2), %v622_v2  ;;  %v627_v7 = vld [vmem:[%s757_s1 + $0x18] sm:$0xff] (!%p170_p2)   ;;  %v629_v9 = vld [vmem:[%s757_s1 + $0x20] sm:$0xff] (!%p170_p2)   ;;  %v631_v12 = vld [vmem:[%s757_s1 + $0x28] sm:$0xff] (!%p170_p2)  }
   0x9   : > { %v632_v13 = vld [vmem:[%s757_s1 + $0x70] sm:$0xff] (!%p170_p2)   ;;  %v634_v15 = vld [vmem:[%s757_s1 + $0x78] sm:$0xff] (!%p170_p2)   ;;  %v410_v21 = vadd.s32 (!%p170_p2), 8, %v409_v19  ;;  %v412_v22 = vadd.s32 (!%p170_p2), %v411_v20, %v409_v19 }
   0xa   : > { %v633_v14 = vld [vmem:[%s757_s1 + $0x30] sm:$0xff] (!%p170_p2)   ;;  %v635_v16 = vld [vmem:[%s757_s1 + $0x38] sm:$0xff] (!%p170_p2)  }
   0xb   : > { %593 = vmatpush3.bf16.msra.mxu0 (!%p170_p2), %v623_v3  ;;  %v413_v23 = vadd.s32 (!%p170_p2), %v411_v20, %v410_v21  ;;  %vm414_vm0 = vcmp.lt.s32.totalorder (!%p170_p2), %v412_v22, 18 }
   0xc   : > { %594 = vmatprep.subr.bf16.mxu0 (!%p170_p2), %v624_v4 }
   0xd   : > { %s762_s19 = smov (!%p205_p3, %s561_s19), 3  ;;  %vm415_vm1 = vcmp.lt.s32.totalorder %v413_v23, 18  ;;  %s764_s16 = smov (!%p217_p4, %s678_s16), 1 }
   0xe   : > { %s589_s8 = sshll.u32 %s762_s19, 3  ;;  %s566_s19 = sshll.u32 %s764_s16, 3 }
   0xf   : > { %595 = vmatpush3.bf16.msra.mxu0 %v625_v5  ;;  %s209_s13 = scalar_lea.vmem %s756_s0, %s589_s8  ;;  %s215_s9 = scalar_lea.vmem %s758_s2, %s589_s8 }
  0x10   : > { %596 = vmatprep.subr.bf16.mxu0 %v626_v6  ;;  %v638_v11 = vld [vmem:[%s209_s13 + $0x4] ss:$8 sps:$4 sm:$0xff]   ;;  %v636_v17 = vld [vmem:[%s209_s13] ss:$8 sps:$4 sm:$0xff]   ;;  %s220_s11 = scalar_lea.vmem %s759_s3, %s566_s19  ;;  %s224_s14 = scalar_lea.vmem %s760_s4, %s566_s19 }
  0x11   : > { %398 = vmatprep.mubr.bf16.mxu0 %v638_v11 }
  0x13   : > { %597 = vmatpush3.bf16.msra.mxu0 %v627_v7 }
  0x14   : > { %598 = vmatprep.subr.bf16.mxu0 %v628_v8 }
  0x17   : > { %599 = vmatpush3.bf16.msra.mxu0 %v629_v9 }
  0x18   : > { %600 = vmatprep.subr.bf16.mxu0 %v630_v10 }
  0x1b   : > { %601 = vmatpush3.bf16.msra.mxu0 %v631_v12 }
  0x1c   : > { %602 = vmatprep.subr.bf16.mxu0 %v632_v13 }
  0x1f   : > { %603 = vmatpush3.bf16.msra.mxu0 %v633_v14 }
  0x20   : > { %604 = vmatprep.subr.bf16.mxu0 %v634_v15 }
  0x23   : > { %605 = vmatpush3.bf16.msra.mxu0 %v635_v16 }
  0x26   : > { %399 = vmatmul.mubr.bf16.vlgmr.msra.gmra.mrb[0].mxu0 %v636_v17 }
  0xf9   : > { %v606_v24 = vpop.f32.mrb[0].mxu0 }
  0xfa   : > { %v607_v25 = vpop.f32.mrb[1].mxu0 }
  0xfb   : > { %v608_v26 = vadd.f32 %v607_v25, %v606_v24  ;;  %v609_v27 = vpop.f32.mrb[2].mxu0 }
  0xfc   : > { %v610_v28 = vpop.f32.mrb[3].mxu0 }
  0xfd   : > { %v416_v29 = vsel %vm414_vm0, %v608_v26, 0.0  ;;  %418 = vst [vmem:[%s215_s9] sm:$0xff] %v608_v26  ;;  %v611_v30 = vadd.f32 %v610_v28, %v609_v27 }
  0xfe   : > { %v427_v32 = vmul.f32 %v416_v29, %v416_v29 }
  0xff   : > { %v417_v31 = vsel %vm415_vm1, %v611_v30, 0.0  ;;  %419 = vst [vmem:[%s215_s9 + $0x8] sm:$0xff] %v611_v30 }
 0x100   : > { %v420_v33 = vadd.f32 %v417_v31, %v416_v29  ;;  %v428_v34 = vmul.f32 %v417_v31, %v417_v31 }
 0x102   : > { %v421_v35 = vrot.slane %v420_v33, 4  ;;  %v429_v36 = vadd.f32 %v428_v34, %v427_v32 }
 0x104   : > { %v422_v37 = vadd.f32 %v421_v35, %v420_v33  ;;  %v430_v38 = vrot.slane %v429_v36, 4 }
 0x106   : > { %v423_v39 = vrot.slane %v422_v37, 2  ;;  %v431_v40 = vadd.f32 %v430_v38, %v429_v36 }
 0x108   : > { %v424_v41 = vadd.f32 %v423_v39, %v422_v37  ;;  %v432_v42 = vrot.slane %v431_v40, 2 }
 0x10a   : > { %v425_v43 = vrot.slane %v424_v41, 1  ;;  %v433_v44 = vadd.f32 %v432_v42, %v431_v40 }
 0x10c   : > { %v426_v45 = vadd.f32 %v425_v43, %v424_v41  ;;  %v434_v46 = vrot.slane %v433_v44, 1 }
 0x10e   : > { %v435_v47 = vadd.f32 %v434_v46, %v433_v44  ;;  %436 = vst [vmem:[%s220_s11] sm:$0xff] %v426_v45 }
 0x110   : > { %437 = vst [vmem:[%s224_s14] sm:$0xff] %v435_v47 }
 0x111 PF: > { %s15_s15 = sadd.s32 1, %s645_s15  }
 0x112   : > { %p12_p5 = scmp.ge.s32.totalorder %s15_s15, 4  }
 0x114   :  { %14 = sbr.rel (!%p12_p5) target bundleno = 1 (0x1), region = 82 }

// kernel: _lambda_.12
= control target key start
LH: loop header
LB: loop body
LE: loop exit
PB: predicated region body
PF: predicated region fallthrough
CT: control target
= control target key end

     0   :  { %s324_s12 = smov 0   ;;  %s347_s0 = inlined_call_operand.vmem [shape: f32[32,128], index: 0, kind: input, shape index: {}]   ;;  %s348_s1 = inlined_call_operand.vmem [shape: f32[1,128], index: 1, kind: input, shape index: {}]   ;;  %s349_s2 = inlined_call_operand.vmem [shape: f32[1,128], index: 2, kind: input, shape index: {}]   ;;  %s350_s3 = inlined_call_operand.vmem [shape: bf16[32,128], index: 3, kind: output, shape index: {}]  }
   0x1 LB: > { %s266_s13 = sadd.s32 4294967295, %s302_s12   ;;  %p270_p0 = scmp.ge.s32.totalorder %s302_s12, 1  ;;  %s302_s12 = sphi %s324_s12, %s13_s12  }
   0x2   : > { %p138_p1 = scmp.lt.s32.totalorder %s302_s12, 3 }
   0x4   : > { %p139_p2 = pnand %p270_p0, %p138_p1 }
   0x5   : > { %s271_s14 = sshll.u32 (!%p139_p2), %s266_s13, 1  ;;  %v275_v0 = vld [vmem:[%s348_s1] ss:$0 sm:$0xff] (!%p139_p2) }
   0x6   : > { %142 = sbr.rel (%p139_p2) target bundleno = 27 (0x1b), region = 32  ;;  %p163_p3 = scmp.lt.s32.totalorder (!%p139_p2), %s271_s14, 3  ;;  %v276_v3 = vld [vmem:[%s349_s2] ss:$0 sm:$0xff] (!%p139_p2) }
   0xd   : > { %s352_s14 = smov (!%p163_p3, %s271_s14), 3 }
   0xe   : > { %s272_s15 = sshll.u32 %s352_s14, 3  ;;  %s274_s23 = sshll.u32 %s352_s14, 2 }
   0xf   : > { %s166_s20 = scalar_lea.vmem %s347_s0, %s272_s15  ;;  %s172_s26 = scalar_lea.vmem %s350_s3, %s274_s23 }
  0x10   : > { %v174_v1 = vld [vmem:[%s166_s20] sm:$0xff]  ;;  %v175_v2 = vld [vmem:[%s166_s20 + $0x8] sm:$0xff] }
  0x11   : > { %v183_v4 = vmul.f32 %v275_v0, %v174_v1  ;;  %v184_v5 = vmul.f32 %v275_v0, %v175_v2 }
  0x13   : > { %v192_v6 = vadd.f32 %v276_v3, %v183_v4  ;;  %v193_v7 = vadd.f32 %v276_v3, %v184_v5 }
  0x15   : > { %vm194_vm0 = vcmp.ge.f32.partialorder %v192_v6, 0.0  ;;  %vm195_vm1 = vcmp.ge.f32.partialorder %v193_v7, 0.0  ;;  %v196_v8 = vmul.f32 0.2, %v192_v6  ;;  %v197_v9 = vmul.f32 0.2, %v193_v7 }
  0x17   : > { %v198_v10 = vsel %vm194_vm0, %v192_v6, %v196_v8  ;;  %v199_v11 = vsel %vm195_vm1, %v193_v7, %v197_v9 }
  0x18   : > { %v286_v12 = vpack.c.bf16 %v199_v11, %v198_v10 }
  0x1a   : > { %287 = vst [vmem:[%s172_s26] sm:$0xff] %v286_v12  }
  0x1b PF: > { %s13_s12 = sadd.s32 1, %s302_s12  }
  0x1c   : > { %p10_p4 = scmp.ge.s32.totalorder %s13_s12, 4  }
  0x1e   :  { %12 = sbr.rel (!%p10_p4) target bundleno = 1 (0x1), region = 62 }

// kernel: _lambda_.13
= control target key start
LH: loop header
LB: loop body
LE: loop exit
PB: predicated region body
PF: predicated region fallthrough
CT: control target
= control target key end

     0   :  { %s912_s15 = smov 0   ;;  %s1041_s0 = inlined_call_operand.vmem [shape: bf16[32,512], index: 0, kind: input, shape index: {}]   ;;  %s1042_s1 = inlined_call_operand.vmem [shape: bf16[512,128], index: 1, kind: input, shape index: {}]   ;;  %s1043_s2 = inlined_call_operand.vmem [shape: f32[32,128], index: 2, kind: output, shape index: {0}]   ;;  %s1044_s3 = inlined_call_operand.vmem [shape: f32[2,8,128], index: 3, kind: output, shape index: {1}]   ;;  %s1045_s4 = inlined_call_operand.vmem [shape: f32[2,8,128], index: 4, kind: output, shape index: {2}]  }
   0x1 LB: > { %s918_s16 = sadd.s32 4294967295, %s885_s15   ;;  %p741_p0 = scmp.ge.s32.totalorder %s885_s15, 1  ;;  %s885_s15 = sphi %s912_s15, %s15_s15  }
   0x2   : > { %p169_p1 = scmp.lt.s32.totalorder %s885_s15, 3 }
   0x4   : > { %p170_p2 = pnand %p741_p0, %p169_p1 }
   0x5   : > { %v841_v0 = vld [vmem:[%s1042_s1 + $0x40] sm:$0xff] (!%p170_p2)   ;;  %v845_v4 = vld [vmem:[%s1042_s1 + $0x48] sm:$0xff] (!%p170_p2)   ;;  %v849_v8 = vld [vmem:[%s1042_s1 + $0x50] sm:$0xff] (!%p170_p2)   ;;  %s742_s25 = sshll.u32 (!%p170_p2), %s918_s16, 1  ;;  %v589_v36 = vlaneseq (!%p170_p2)  ;;  %s785_s13 = sshll.u32 (!%p170_p2), %s918_s16, 4 }
   0x6   : > { %173 = sbr.rel (%p170_p2) target bundleno = 277 (0x115), region = 28  ;;  %v842_v1 = vld [vmem:[%s1042_s1 + $0xc0] sm:$0xff] (!%p170_p2)   ;;  %789 = vmatprep.subr.bf16.mxu0 (!%p170_p2), %v841_v0  ;;  %v846_v5 = vld [vmem:[%s1042_s1 + $0xc8] sm:$0xff] (!%p170_p2)   ;;  %v850_v9 = vld [vmem:[%s1042_s1 + $0xd0] sm:$0xff] (!%p170_p2)   ;;  %p205_p3 = scmp.lt.s32.totalorder (!%p170_p2), %s742_s25, 3  ;;  %v592_v38 = vstv (!%p170_p2), %s785_s13 }
   0x7   : > { %v843_v2 = vld [vmem:[%s1042_s1] sm:$0xff] (!%p170_p2)   ;;  %811 = vmatprep.subr.bf16.mxu1 (!%p170_p2), %v842_v1  ;;  %v847_v6 = vld [vmem:[%s1042_s1 + $0x8] sm:$0xff] (!%p170_p2)   ;;  %v851_v10 = vld [vmem:[%s1042_s1 + $0x10] sm:$0xff] (!%p170_p2)   ;;  %v590_v37 = vshrl.u32 (!%p170_p2), %v589_v36, 7  ;;  %p217_p4 = scmp.lt.s32.totalorder (!%p170_p2), %s918_s16, 1 }
   0x8   : > { %v844_v3 = vld [vmem:[%s1042_s1 + $0x80] sm:$0xff] (!%p170_p2)   ;;  %790 = vmatpush3.bf16.msra.mxu0 (!%p170_p2), %v843_v2  ;;  %v848_v7 = vld [vmem:[%s1042_s1 + $0x88] sm:$0xff] (!%p170_p2)   ;;  %v852_v11 = vld [vmem:[%s1042_s1 + $0x90] sm:$0xff] (!%p170_p2)  }
   0x9   : > { %812 = vmatpush3.bf16.msra.mxu1 (!%p170_p2), %v844_v3  ;;  %791 = vmatprep.subr.bf16.mxu0 (!%p170_p2), %v845_v4  ;;  %v853_v12 = vld [vmem:[%s1042_s1 + $0x58] sm:$0xff] (!%p170_p2)   ;;  %v857_v16 = vld [vmem:[%s1042_s1 + $0x60] sm:$0xff] (!%p170_p2)   ;;  %v861_v20 = vld [vmem:[%s1042_s1 + $0x68] sm:$0xff] (!%p170_p2)   ;;  %v591_v39 = vadd.s32 (!%p170_p2), 8, %v590_v37  ;;  %v593_v41 = vadd.s32 (!%p170_p2), %v592_v38, %v590_v37 }
   0xa   : > { %813 = vmatprep.subr.bf16.mxu1 (!%p170_p2), %v846_v5  ;;  %v854_v13 = vld [vmem:[%s1042_s1 + $0xd8] sm:$0xff] (!%p170_p2)   ;;  %v858_v17 = vld [vmem:[%s1042_s1 + $0xe0] sm:$0xff] (!%p170_p2)   ;;  %v862_v21 = vld [vmem:[%s1042_s1 + $0xe8] sm:$0xff] (!%p170_p2)  }
   0xb   : > { %v855_v14 = vld [vmem:[%s1042_s1 + $0x18] sm:$0xff] (!%p170_p2)   ;;  %v859_v18 = vld [vmem:[%s1042_s1 + $0x20] sm:$0xff] (!%p170_p2)   ;;  %v863_v22 = vld [vmem:[%s1042_s1 + $0x28] sm:$0xff] (!%p170_p2)   ;;  %v594_v47 = vadd.s32 (!%p170_p2), %v592_v38, %v591_v39  ;;  %vm595_vm0 = vcmp.lt.s32.totalorder (!%p170_p2), %v593_v41, 32 }
   0xc   : > { %792 = vmatpush3.bf16.msra.mxu0 (!%p170_p2), %v847_v6  ;;  %v856_v15 = vld [vmem:[%s1042_s1 + $0x98] sm:$0xff] (!%p170_p2)   ;;  %v860_v19 = vld [vmem:[%s1042_s1 + $0xa0] sm:$0xff] (!%p170_p2)   ;;  %v864_v23 = vld [vmem:[%s1042_s1 + $0xa8] sm:$0xff] (!%p170_p2)  }
   0xd   : > { %814 = vmatpush3.bf16.msra.mxu1 %v848_v7  ;;  %793 = vmatprep.subr.bf16.mxu0 %v849_v8  ;;  %s1047_s25 = smov (!%p205_p3, %s742_s25), 3  ;;  %v865_v24 = vld [vmem:[%s1042_s1 + $0x70] sm:$0xff]   ;;  %v869_v28 = vld [vmem:[%s1042_s1 + $0x78] sm:$0xff]   ;;  %vm596_vm1 = vcmp.lt.s32.totalorder %v594_v47, 32  ;;  %s1049_s16 = smov (!%p217_p4, %s918_s16), 1 }
   0xe   : > { %815 = vmatprep.subr.bf16.mxu1 %v850_v9  ;;  %v866_v25 = vld [vmem:[%s1042_s1 + $0xf0] sm:$0xff]   ;;  %s788_s24 = sshll.u32 %s1047_s25, 4  ;;  %v870_v29 = vld [vmem:[%s1042_s1 + $0xf8] sm:$0xff]   ;;  %s746_s14 = sshll.u32 %s1047_s25, 3 }
   0xf   : > { %v867_v26 = vld [vmem:[%s1042_s1 + $0x30] sm:$0xff]   ;;  %s209_s8 = scalar_lea.vmem %s1041_s0, %s788_s24  ;;  %v871_v30 = vld [vmem:[%s1042_s1 + $0x38] sm:$0xff]   ;;  %s215_s19 = scalar_lea.vmem %s1043_s2, %s746_s14 }
  0x10   : > { %794 = vmatpush3.bf16.msra.mxu0 %v851_v10  ;;  %v868_v27 = vld [vmem:[%s1042_s1 + $0xb0] sm:$0xff]   ;;  %v872_v31 = vld [vmem:[%s1042_s1 + $0xb8] sm:$0xff]   ;;  %s747_s25 = sshll.u32 %s1049_s16, 3 }
  0x11   : > { %816 = vmatpush3.bf16.msra.mxu1 %v852_v11  ;;  %795 = vmatprep.subr.bf16.mxu0 %v853_v12  ;;  %v873_v32 = vld [vmem:[%s209_s8] ss:$16 sps:$4 sm:$0xff]   ;;  %v875_v33 = vld [vmem:[%s209_s8 + $0x4] ss:$16 sps:$4 sm:$0xff]   ;;  %v876_v34 = vld [vmem:[%s209_s8 + $0x8] ss:$16 sps:$4 sm:$0xff]   ;;  %s220_s22 = scalar_lea.vmem %s1044_s3, %s747_s25  ;;  %s224_s26 = scalar_lea.vmem %s1045_s4, %s747_s25 }
  0x12   : > { %817 = vmatprep.subr.bf16.mxu1 %v854_v13  ;;  %v878_v35 = vld [vmem:[%s209_s8 + $0xc] ss:$16 sps:$4 sm:$0xff]   ;;  %538 = vmatprep.mubr.bf16.mxu0 %v875_v33 }
  0x13   : > { %579 = vmatprep.mubr.bf16.mxu1 %v878_v35 }
  0x14   : > { %796 = vmatpush3.bf16.msra.mxu0 %v855_v14 }
  0x15   : > { %818 = vmatpush3.bf16.msra.mxu1 %v856_v15  ;;  %797 = vmatprep.subr.bf16.mxu0 %v857_v16 }
  0x16   : > { %819 = vmatprep.subr.bf16.mxu1 %v858_v17 }
  0x18   : > { %798 = vmatpush3.bf16.msra.mxu0 %v859_v18 }
  0x19   : > { %820 = vmatpush3.bf16.msra.mxu1 %v860_v19  ;;  %799 = vmatprep.subr.bf16.mxu0 %v861_v20 }
  0x1a   : > { %821 = vmatprep.subr.bf16.mxu1 %v862_v21 }
  0x1c   : > { %800 = vmatpush3.bf16.msra.mxu0 %v863_v22 }
  0x1d   : > { %822 = vmatpush3.bf16.msra.mxu1 %v864_v23  ;;  %801 = vmatprep.subr.bf16.mxu0 %v865_v24 }
  0x1e   : > { %823 = vmatprep.subr.bf16.mxu1 %v866_v25 }
  0x20   : > { %802 = vmatpush3.bf16.msra.mxu0 %v867_v26 }
  0x21   : > { %824 = vmatpush3.bf16.msra.mxu1 %v868_v27  ;;  %803 = vmatprep.subr.bf16.mxu0 %v869_v28 }
  0x22   : > { %825 = vmatprep.subr.bf16.mxu1 %v870_v29 }
  0x24   : > { %804 = vmatpush3.bf16.msra.mxu0 %v871_v30 }
  0x25   : > { %826 = vmatpush3.bf16.msra.mxu1 %v872_v31 }
  0x27   : > { %539 = vmatmul.mubr.bf16.vlgmr.msra.gmra.mrb[0].mxu0 %v873_v32 }
  0x28   : > { %580 = vmatmul.mubr.bf16.vlgmr.msra.gmra.mrb[0].mxu1 %v876_v34 }
  0xfa   : > { %v805_v40 = vpop.f32.mrb[0].mxu0 }
  0xfb   : > { %v827_v42 = vpop.f32.mrb[0].mxu1  ;;  %v806_v43 = vpop.f32.mrb[1].mxu0 }
  0xfc   : > { %v807_v44 = vadd.f32 %v806_v43, %v805_v40  ;;  %v828_v45 = vpop.f32.mrb[1].mxu1  ;;  %v808_v46 = vpop.f32.mrb[2].mxu0 }
  0xfd   : > { %v829_v48 = vadd.f32 %v828_v45, %v827_v42  ;;  %v830_v49 = vpop.f32.mrb[2].mxu1  ;;  %v809_v50 = vpop.f32.mrb[3].mxu0 }
  0xfe   : > { %v810_v51 = vadd.f32 %v809_v50, %v808_v46  ;;  %v831_v52 = vpop.f32.mrb[3].mxu1 }
  0xff   : > { %v582_v53 = vadd.f32 %v829_v48, %v807_v44  ;;  %v832_v54 = vadd.f32 %v831_v52, %v830_v49 }
 0x101   : > { %v597_v55 = vsel %vm595_vm0, %v582_v53, 0.0  ;;  %599 = vst [vmem:[%s215_s19] sm:$0xff] %v582_v53  ;;  %v585_v56 = vadd.f32 %v832_v54, %v810_v51 }
 0x102   : > { %v608_v58 = vmul.f32 %v597_v55, %v597_v55 }
 0x103   : > { %v598_v57 = vsel %vm596_vm1, %v585_v56, 0.0  ;;  %600 = vst [vmem:[%s215_s19 + $0x8] sm:$0xff] %v585_v56 }
 0x104   : > { %v601_v59 = vadd.f32 %v598_v57, %v597_v55  ;;  %v609_v60 = vmul.f32 %v598_v57, %v598_v57 }
 0x106   : > { %v602_v61 = vrot.slane %v601_v59, 4  ;;  %v610_v62 = vadd.f32 %v609_v60, %v608_v58 }
 0x108   : > { %v603_v63 = vadd.f32 %v602_v61, %v601_v59  ;;  %v611_v0 = vrot.slane %v610_v62, 4 }
 0x10a   : > { %v604_v1 = vrot.slane %v603_v63, 2  ;;  %v612_v2 = vadd.f32 %v611_v0, %v610_v62 }
 0x10c   : > { %v605_v3 = vadd.f32 %v604_v1, %v603_v63  ;;  %v613_v4 = vrot.slane %v612_v2, 2 }
 0x10e   : > { %v606_v5 = vrot.slane %v605_v3, 1  ;;  %v614_v6 = vadd.f32 %v613_v4, %v612_v2 }
 0x110   : > { %v607_v7 = vadd.f32 %v606_v5, %v605_v3  ;;  %v615_v8 = vrot.slane %v614_v6, 1 }
 0x112   : > { %v616_v9 = vadd.f32 %v615_v8, %v614_v6  ;;  %617 = vst [vmem:[%s220_s22] sm:$0xff] %v607_v7 }
 0x114   : > { %618 = vst [vmem:[%s224_s26] sm:$0xff] %v616_v9 }
 0x115 PF: > { %s15_s15 = sadd.s32 1, %s885_s15  }
 0x116   : > { %p12_p5 = scmp.ge.s32.totalorder %s15_s15, 4  }
 0x118   :  { %14 = sbr.rel (!%p12_p5) target bundleno = 1 (0x1), region = 82 }

// kernel: _lambda_.15
= control target key start
LH: loop header
LB: loop body
LE: loop exit
PB: predicated region body
PF: predicated region fallthrough
CT: control target
= control target key end

     0   :  { %s1403_s15 = smov 0   ;;  %s1642_s0 = inlined_call_operand.vmem [shape: bf16[64,1024], index: 0, kind: input, shape index: {}]   ;;  %s1643_s1 = inlined_call_operand.vmem [shape: bf16[1024,128], index: 1, kind: input, shape index: {}]   ;;  %s1644_s2 = inlined_call_operand.vmem [shape: f32[1,128], index: 2, kind: input, shape index: {}]   ;;  %s1645_s3 = inlined_call_operand.vmem [shape: f32[1,128], index: 3, kind: input, shape index: {}]   ;;  %s1646_s4 = inlined_call_operand.vmem [shape: f32[64,128], index: 4, kind: output, shape index: {}]  }
   0x1 LB: > { %s1091_s16 = sadd.s32 4294967295, %s1376_s15   ;;  %p1095_p0 = scmp.ge.s32.totalorder %s1376_s15, 1  ;;  %s1376_s15 = sphi %s1403_s15, %s14_s15  }
   0x2   : > { %p164_p1 = scmp.lt.s32.totalorder %s1376_s15, 3 }
   0x4   : > { %p165_p2 = pnand %p1095_p0, %p164_p1 }
   0x5   : > { %v1306_v0 = vld [vmem:[%s1643_s1 + $0x40] sm:$0xff] (!%p165_p2)   ;;  %v1310_v4 = vld [vmem:[%s1643_s1 + $0x48] sm:$0xff] (!%p165_p2)   ;;  %v1314_v8 = vld [vmem:[%s1643_s1 + $0x50] sm:$0xff] (!%p165_p2)   ;;  %s1096_s25 = sshll.u32 (!%p165_p2), %s1091_s16, 2 }
   0x6   : > { %168 = sbr.rel (%p165_p2) target bundleno = 305 (0x131), region = 36  ;;  %v1307_v1 = vld [vmem:[%s1643_s1 + $0xc0] sm:$0xff] (!%p165_p2)   ;;  %1186 = vmatprep.subr.bf16.mxu0 (!%p165_p2), %v1306_v0  ;;  %v1311_v5 = vld [vmem:[%s1643_s1 + $0xc8] sm:$0xff] (!%p165_p2)   ;;  %v1315_v9 = vld [vmem:[%s1643_s1 + $0xd0] sm:$0xff] (!%p165_p2)   ;;  %p192_p3 = scmp.lt.s32.totalorder (!%p165_p2), %s1096_s25, 7 }
   0x7   : > { %v1308_v2 = vld [vmem:[%s1643_s1] sm:$0xff] (!%p165_p2)   ;;  %1214 = vmatprep.subr.bf16.mxu1 (!%p165_p2), %v1307_v1  ;;  %v1312_v6 = vld [vmem:[%s1643_s1 + $0x8] sm:$0xff] (!%p165_p2)   ;;  %v1316_v10 = vld [vmem:[%s1643_s1 + $0x10] sm:$0xff] (!%p165_p2)  }
   0x8   : > { %v1309_v3 = vld [vmem:[%s1643_s1 + $0x80] sm:$0xff] (!%p165_p2)   ;;  %1187 = vmatpush3.bf16.msra.mxu0 (!%p165_p2), %v1308_v2  ;;  %v1313_v7 = vld [vmem:[%s1643_s1 + $0x88] sm:$0xff] (!%p165_p2)   ;;  %v1317_v11 = vld [vmem:[%s1643_s1 + $0x90] sm:$0xff] (!%p165_p2)  }
   0x9   : > { %1215 = vmatpush3.bf16.msra.mxu1 (!%p165_p2), %v1309_v3  ;;  %1188 = vmatprep.subr.bf16.mxu0 (!%p165_p2), %v1310_v4  ;;  %v1318_v12 = vld [vmem:[%s1643_s1 + $0x58] sm:$0xff] (!%p165_p2)   ;;  %v1322_v16 = vld [vmem:[%s1643_s1 + $0x60] sm:$0xff] (!%p165_p2)   ;;  %v1326_v20 = vld [vmem:[%s1643_s1 + $0x68] sm:$0xff] (!%p165_p2)  }
   0xa   : > { %1216 = vmatprep.subr.bf16.mxu1 (!%p165_p2), %v1311_v5  ;;  %v1319_v13 = vld [vmem:[%s1643_s1 + $0xd8] sm:$0xff] (!%p165_p2)   ;;  %v1323_v17 = vld [vmem:[%s1643_s1 + $0xe0] sm:$0xff] (!%p165_p2)   ;;  %v1327_v21 = vld [vmem:[%s1643_s1 + $0xe8] sm:$0xff] (!%p165_p2)  }
   0xb   : > { %v1320_v14 = vld [vmem:[%s1643_s1 + $0x18] sm:$0xff] (!%p165_p2)   ;;  %v1324_v18 = vld [vmem:[%s1643_s1 + $0x20] sm:$0xff] (!%p165_p2)   ;;  %v1328_v22 = vld [vmem:[%s1643_s1 + $0x28] sm:$0xff] (!%p165_p2)  }
   0xc   : > { %1189 = vmatpush3.bf16.msra.mxu0 (!%p165_p2), %v1312_v6  ;;  %v1321_v15 = vld [vmem:[%s1643_s1 + $0x98] sm:$0xff] (!%p165_p2)   ;;  %v1325_v19 = vld [vmem:[%s1643_s1 + $0xa0] sm:$0xff] (!%p165_p2)   ;;  %v1329_v23 = vld [vmem:[%s1643_s1 + $0xa8] sm:$0xff] (!%p165_p2)  }
   0xd   : > { %1217 = vmatpush3.bf16.msra.mxu1 %v1313_v7  ;;  %1190 = vmatprep.subr.bf16.mxu0 %v1314_v8  ;;  %s1648_s25 = smov (!%p192_p3, %s1096_s25), 7  ;;  %v1330_v24 = vld [vmem:[%s1643_s1 + $0x70] sm:$0xff]   ;;  %v1334_v28 = vld [vmem:[%s1643_s1 + $0x78] sm:$0xff]   ;;  %v1338_v40 = vld [vmem:[%s1643_s1 + $0x140] sm:$0xff]  }
   0xe   : > { %1218 = vmatprep.subr.bf16.mxu1 %v1315_v9  ;;  %v1331_v25 = vld [vmem:[%s1643_s1 + $0xf0] sm:$0xff]   ;;  %s1185_s23 = sshll.u32 %s1648_s25, 5  ;;  %v1335_v29 = vld [vmem:[%s1643_s1 + $0xf8] sm:$0xff]   ;;  %v1339_v41 = vld [vmem:[%s1643_s1 + $0x1c0] sm:$0xff]   ;;  %s1100_s16 = sshll.u32 %s1648_s25, 3 }
   0xf   : > { %v1332_v26 = vld [vmem:[%s1643_s1 + $0x30] sm:$0xff]   ;;  %s1509_s7 = scalar_lea.vmem %s1642_s0, %s1185_s23  ;;  %v1336_v30 = vld [vmem:[%s1643_s1 + $0x38] sm:$0xff]   ;;  %v1340_v42 = vld [vmem:[%s1643_s1 + $0x100] sm:$0xff]   ;;  %s202_s12 = scalar_lea.vmem %s1646_s4, %s1100_s16 }
  0x10   : > { %1191 = vmatpush3.bf16.msra.mxu0 %v1316_v10  ;;  %v1333_v27 = vld [vmem:[%s1643_s1 + $0xb0] sm:$0xff]   ;;  %v1337_v31 = vld [vmem:[%s1643_s1 + $0xb8] sm:$0xff]   ;;  %v205_v32 = vld [vmem:[%s1509_s7] sm:$0xff] }
  0x11   : > { %1219 = vmatpush3.bf16.msra.mxu1 %v1317_v11  ;;  %1192 = vmatprep.subr.bf16.mxu0 %v1318_v12  ;;  %v209_v33 = vld [vmem:[%s1509_s7 + $0x20] sm:$0xff]  ;;  %v206_v34 = vld [vmem:[%s1509_s7 + $0x8] sm:$0xff]  ;;  %v1346_v48 = vld [vmem:[%s1643_s1 + $0x150] sm:$0xff]  }
  0x12   : > { %1220 = vmatprep.subr.bf16.mxu1 %v1319_v13  ;;  %v1101_v35 = vcombine.low %v205_v32, %v209_v33  ;;  %v1102_v36 = vcombine.high %v205_v32, %v209_v33  ;;  %v210_v37 = vld [vmem:[%s1509_s7 + $0x28] sm:$0xff]  ;;  %v1341_v43 = vld [vmem:[%s1643_s1 + $0x180] sm:$0xff]   ;;  %v1347_v49 = vld [vmem:[%s1643_s1 + $0x1d0] sm:$0xff]  }
  0x13   : > { %v1103_v38 = vcombine.low %v206_v34, %v210_v37  ;;  %v1104_v39 = vcombine.high %v206_v34, %v210_v37  ;;  %v1342_v44 = vld [vmem:[%s1643_s1 + $0x148] sm:$0xff]   ;;  %v1348_v50 = vld [vmem:[%s1643_s1 + $0x110] sm:$0xff]   ;;  %v1350_v52 = vld [vmem:[%s1643_s1 + $0x158] sm:$0xff]  }
  0x14   : > { %1193 = vmatpush3.bf16.msra.mxu0 %v1320_v14  ;;  %845 = vmatprep.mubr.bf16.mxu0 %v1102_v36  ;;  %v1343_v45 = vld [vmem:[%s1643_s1 + $0x1c8] sm:$0xff]   ;;  %v1349_v51 = vld [vmem:[%s1643_s1 + $0x190] sm:$0xff]   ;;  %v1351_v53 = vld [vmem:[%s1643_s1 + $0x1d8] sm:$0xff]  }
  0x15   : > { %1221 = vmatpush3.bf16.msra.mxu1 %v1321_v15  ;;  %1194 = vmatprep.subr.bf16.mxu0 %v1322_v16  ;;  %v1344_v46 = vld [vmem:[%s1643_s1 + $0x108] sm:$0xff]   ;;  %v1352_v54 = vld [vmem:[%s1643_s1 + $0x118] sm:$0xff]   ;;  %v1354_v56 = vld [vmem:[%s1643_s1 + $0x160] sm:$0xff]  }
  0x16   : > { %1222 = vmatprep.subr.bf16.mxu1 %v1323_v17  ;;  %894 = vmatprep.mubr.bf16.mxu1 %v1104_v39  ;;  %v1345_v47 = vld [vmem:[%s1643_s1 + $0x188] sm:$0xff]   ;;  %v1353_v55 = vld [vmem:[%s1643_s1 + $0x198] sm:$0xff]   ;;  %v1355_v57 = vld [vmem:[%s1643_s1 + $0x1e0] sm:$0xff]  }
  0x17   : > { %v1356_v58 = vld [vmem:[%s1643_s1 + $0x120] sm:$0xff]   ;;  %v214_v63 = vld [vmem:[%s1509_s7 + $0x48] sm:$0xff]  ;;  %v1362_v8 = vld [vmem:[%s1643_s1 + $0x170] sm:$0xff]  }
  0x18   : > { %1195 = vmatpush3.bf16.msra.mxu0 %v1324_v18  ;;  %v1357_v59 = vld [vmem:[%s1643_s1 + $0x1a0] sm:$0xff]   ;;  %v218_v0 = vld [vmem:[%s1509_s7 + $0x68] sm:$0xff]  ;;  %v1363_v9 = vld [vmem:[%s1643_s1 + $0x1f0] sm:$0xff]  }
  0x19   : > { %1223 = vmatpush3.bf16.msra.mxu1 %v1325_v19  ;;  %1196 = vmatprep.subr.bf16.mxu0 %v1326_v20  ;;  %v213_v60 = vld [vmem:[%s1509_s7 + $0x40] sm:$0xff]  ;;  %v1112_v2 = vcombine.high %v214_v63, %v218_v0  ;;  %v1358_v3 = vld [vmem:[%s1643_s1 + $0x168] sm:$0xff]   ;;  %v1111_v4 = vcombine.low %v214_v63, %v218_v0  ;;  %v1364_v10 = vld [vmem:[%s1643_s1 + $0x130] sm:$0xff]  }
  0x1a   : > { %1224 = vmatprep.subr.bf16.mxu1 %v1327_v21  ;;  %v217_v61 = vld [vmem:[%s1509_s7 + $0x60] sm:$0xff]  ;;  %v1359_v5 = vld [vmem:[%s1643_s1 + $0x1e8] sm:$0xff]   ;;  %v1365_v11 = vld [vmem:[%s1643_s1 + $0x1b0] sm:$0xff]  }
  0x1b   : > { %v1110_v62 = vcombine.high %v213_v60, %v217_v61  ;;  %v1109_v1 = vcombine.low %v213_v60, %v217_v61  ;;  %v1360_v6 = vld [vmem:[%s1643_s1 + $0x128] sm:$0xff]   ;;  %v1366_v12 = vld [vmem:[%s1643_s1 + $0x178] sm:$0xff]   ;;  %v207_v16 = vld [vmem:[%s1509_s7 + $0x10] sm:$0xff] }
  0x1c   : > { %1197 = vmatpush3.bf16.msra.mxu0 %v1328_v22  ;;  %v1361_v7 = vld [vmem:[%s1643_s1 + $0x1a8] sm:$0xff]   ;;  %v1367_v13 = vld [vmem:[%s1643_s1 + $0x1f8] sm:$0xff]   ;;  %v211_v17 = vld [vmem:[%s1509_s7 + $0x30] sm:$0xff] }
  0x1d   : > { %1225 = vmatpush3.bf16.msra.mxu1 %v1329_v23  ;;  %1198 = vmatprep.subr.bf16.mxu0 %v1330_v24  ;;  %v1368_v14 = vld [vmem:[%s1643_s1 + $0x138] sm:$0xff]   ;;  %v1105_v20 = vcombine.low %v207_v16, %v211_v17  ;;  %v1106_v21 = vcombine.high %v207_v16, %v211_v17  ;;  %v215_v24 = vld [vmem:[%s1509_s7 + $0x50] sm:$0xff] }
  0x1e   : > { %1226 = vmatprep.subr.bf16.mxu1 %v1331_v25  ;;  %v1369_v15 = vld [vmem:[%s1643_s1 + $0x1b8] sm:$0xff]   ;;  %v219_v25 = vld [vmem:[%s1509_s7 + $0x70] sm:$0xff] }
  0x1f   : > { %v208_v18 = vld [vmem:[%s1509_s7 + $0x18] sm:$0xff] }
  0x20   : > { %1199 = vmatpush3.bf16.msra.mxu0 %v1332_v26  ;;  %v212_v19 = vld [vmem:[%s1509_s7 + $0x38] sm:$0xff] }
  0x21   : > { %1227 = vmatpush3.bf16.msra.mxu1 %v1333_v27  ;;  %1200 = vmatprep.subr.bf16.mxu0 %v1334_v28  ;;  %v1107_v22 = vcombine.low %v208_v18, %v212_v19  ;;  %v1108_v23 = vcombine.high %v208_v18, %v212_v19  ;;  %v216_v26 = vld [vmem:[%s1509_s7 + $0x58] sm:$0xff]  ;;  %v1114_v27 = vcombine.high %v215_v24, %v219_v25 }
  0x22   : > { %1228 = vmatprep.subr.bf16.mxu1 %v1335_v29  ;;  %v220_v28 = vld [vmem:[%s1509_s7 + $0x78] sm:$0xff] }
  0x23   : > { %v1116_v29 = vcombine.high %v216_v26, %v220_v28 }
  0x24   : > { %1201 = vmatpush3.bf16.msra.mxu0 %v1336_v30  ;;  %v1113_v30 = vcombine.low %v215_v24, %v219_v25 }
  0x25   : > { %1229 = vmatpush3.bf16.msra.mxu1 %v1337_v31  ;;  %1242 = vmatprep.subr.bf16.mxu0 %v1338_v40  ;;  %v1115_v31 = vcombine.low %v216_v26, %v220_v28 }
  0x26   : > { %1270 = vmatprep.subr.bf16.mxu1 %v1339_v41 }
  0x27   : > { %846 = vmatmul.mubr.bf16.vlgmr.msra.gmra.mrb[0].mxu0 %v1101_v35 }
  0x28   : > { %895 = vmatmul.mubr.bf16.vlgmr.msra.gmra.mrb[0].mxu1 %v1103_v38  ;;  %1243 = vmatpush3.bf16.msra.mxu0 %v1340_v42 }
  0x29   : > { %1271 = vmatpush3.bf16.msra.mxu1 %v1341_v43  ;;  %1244 = vmatprep.subr.bf16.mxu0 %v1342_v44 }
  0x2a   : > { %1272 = vmatprep.subr.bf16.mxu1 %v1343_v45  ;;  %853 = vmatprep.mubr.bf16.mxu0 %v1110_v62 }
  0x2b   : > { %902 = vmatprep.mubr.bf16.mxu1 %v1112_v2 }
  0x2c   : > { %1245 = vmatpush3.bf16.msra.mxu0 %v1344_v46 }
  0x2d   : > { %1273 = vmatpush3.bf16.msra.mxu1 %v1345_v47  ;;  %1246 = vmatprep.subr.bf16.mxu0 %v1346_v48 }
  0x2e   : > { %1274 = vmatprep.subr.bf16.mxu1 %v1347_v49 }
  0x2f   : > { %854 = vmatmul.mubr.bf16.gmra.mrb[4].mxu0 %v1109_v1 }
  0x30   : > { %1247 = vmatpush3.bf16.msra.mxu0 %v1348_v50  ;;  %903 = vmatmul.mubr.bf16.gmra.mrb[4].mxu1 %v1111_v4 }
  0x31   : > { %1275 = vmatpush3.bf16.msra.mxu1 %v1349_v51  ;;  %1248 = vmatprep.subr.bf16.mxu0 %v1350_v52 }
  0x32   : > { %1276 = vmatprep.subr.bf16.mxu1 %v1351_v53  ;;  %943 = vmatprep.mubr.bf16.mxu0 %v1106_v21 }
  0x33   : > { %992 = vmatprep.mubr.bf16.mxu1 %v1108_v23 }
  0x34   : > { %1249 = vmatpush3.bf16.msra.mxu0 %v1352_v54 }
  0x35   : > { %1277 = vmatpush3.bf16.msra.mxu1 %v1353_v55  ;;  %1250 = vmatprep.subr.bf16.mxu0 %v1354_v56 }
  0x36   : > { %1278 = vmatprep.subr.bf16.mxu1 %v1355_v57 }
  0x38   : > { %1251 = vmatpush3.bf16.msra.mxu0 %v1356_v58 }
  0x39   : > { %1279 = vmatpush3.bf16.msra.mxu1 %v1357_v59  ;;  %1252 = vmatprep.subr.bf16.mxu0 %v1358_v3 }
  0x3a   : > { %1280 = vmatprep.subr.bf16.mxu1 %v1359_v5 }
  0x3c   : > { %1253 = vmatpush3.bf16.msra.mxu0 %v1360_v6 }
  0x3d   : > { %1281 = vmatpush3.bf16.msra.mxu1 %v1361_v7  ;;  %1254 = vmatprep.subr.bf16.mxu0 %v1362_v8 }
  0x3e   : > { %1282 = vmatprep.subr.bf16.mxu1 %v1363_v9  ;;  %v1181_v9 = vld [vmem:[%s1644_s2] ss:$0 sm:$0xff] }
  0x40   : > { %1255 = vmatpush3.bf16.msra.mxu0 %v1364_v10 }
  0x41   : > { %1283 = vmatpush3.bf16.msra.mxu1 %v1365_v11  ;;  %1256 = vmatprep.subr.bf16.mxu0 %v1366_v12  ;;  %v1182_v12 = vld [vmem:[%s1645_s3] ss:$0 sm:$0xff] }
  0x42   : > { %1284 = vmatprep.subr.bf16.mxu1 %v1367_v13 }
  0x44   : > { %1257 = vmatpush3.bf16.msra.mxu0 %v1368_v14 }
  0x45   : > { %1285 = vmatpush3.bf16.msra.mxu1 %v1369_v15 }
  0x47   : > { %944 = vmatmul.mubr.bf16.vlgmr.msra.gmra.mrb[8].mxu0 %v1105_v20 }
  0x48   : > { %993 = vmatmul.mubr.bf16.vlgmr.msra.gmra.mrb[8].mxu1 %v1107_v22  ;;  %951 = vmatprep.mubr.bf16.mxu0 %v1114_v27 }
  0x49   : > { %1000 = vmatprep.mubr.bf16.mxu1 %v1116_v29 }
  0x4f   : > { %952 = vmatmul.mubr.bf16.gmra.mrb[12].mxu0 %v1113_v30 }
  0x50   : > { %1001 = vmatmul.mubr.bf16.gmra.mrb[12].mxu1 %v1115_v31 }
  0xfa   : > { %v1202_v32 = vpop.f32.mrb[0].mxu0 }
  0xfb   : > { %v1230_v33 = vpop.f32.mrb[0].mxu1  ;;  %v1203_v34 = vpop.f32.mrb[1].mxu0 }
  0xfc   : > { %v1204_v35 = vadd.f32 %v1203_v34, %v1202_v32  ;;  %v1231_v36 = vpop.f32.mrb[1].mxu1  ;;  %v1205_v37 = vpop.f32.mrb[2].mxu0 }
  0xfd   : > { %v1232_v38 = vadd.f32 %v1231_v36, %v1230_v33  ;;  %v1233_v39 = vpop.f32.mrb[2].mxu1  ;;  %v1206_v40 = vpop.f32.mrb[3].mxu0 }
  0xfe   : > { %v1207_v41 = vadd.f32 %v1206_v40, %v1205_v37  ;;  %v1234_v42 = vpop.f32.mrb[3].mxu1 }
  0xff   : > { %v897_v43 = vadd.f32 %v1232_v38, %v1204_v35  ;;  %v1235_v44 = vadd.f32 %v1234_v42, %v1233_v39 }
 0x101   : > { %v900_v45 = vadd.f32 %v1235_v44, %v1207_v41 }
 0x102   : > { %v1208_v46 = vpop.f32.mrb[4].mxu0 }
 0x103   : > { %v1236_v47 = vpop.f32.mrb[4].mxu1  ;;  %v1209_v48 = vpop.f32.mrb[5].mxu0 }
 0x104   : > { %v1210_v49 = vadd.f32 %v1209_v48, %v1208_v46  ;;  %v1237_v50 = vpop.f32.mrb[5].mxu1  ;;  %v1211_v51 = vpop.f32.mrb[6].mxu0 }
 0x105   : > { %v1238_v52 = vadd.f32 %v1237_v50, %v1236_v47  ;;  %v1239_v53 = vpop.f32.mrb[6].mxu1  ;;  %v1212_v54 = vpop.f32.mrb[7].mxu0 }
 0x106   : > { %v1213_v55 = vadd.f32 %v1212_v54, %v1211_v51  ;;  %v1240_v56 = vpop.f32.mrb[7].mxu1 }
 0x107   : > { %v905_v57 = vadd.f32 %v1238_v52, %v1210_v49  ;;  %v1241_v58 = vadd.f32 %v1240_v56, %v1239_v53 }
 0x109   : > { %v908_v59 = vadd.f32 %v1241_v58, %v1213_v55 }
 0x11a   : > { %v1258_v60 = vpop.f32.mrb[8].mxu0 }
 0x11b   : > { %v1286_v61 = vpop.f32.mrb[8].mxu1  ;;  %v1259_v62 = vpop.f32.mrb[9].mxu0 }
 0x11c   : > { %v1287_v63 = vpop.f32.mrb[9].mxu1  ;;  %v1260_v0 = vadd.f32 %v1259_v62, %v1258_v60  ;;  %v1261_v2 = vpop.f32.mrb[10].mxu0 }
 0x11d   : > { %v1288_v1 = vadd.f32 %v1287_v63, %v1286_v61  ;;  %v1289_v3 = vpop.f32.mrb[10].mxu1  ;;  %v1262_v4 = vpop.f32.mrb[11].mxu0 }
 0x11e   : > { %v1290_v5 = vpop.f32.mrb[11].mxu1  ;;  %v946_v6 = vadd.f32 %v1260_v0, %v897_v43  ;;  %v1263_v7 = vadd.f32 %v1262_v4, %v1261_v2 }
 0x11f   : > { %v1291_v8 = vadd.f32 %v1290_v5, %v1289_v3 }
 0x120   : > { %v995_v10 = vadd.f32 %v1288_v1, %v946_v6  ;;  %v949_v11 = vadd.f32 %v1263_v7, %v900_v45 }
 0x122   : > { %v1016_v13 = vmul.f32 %v1181_v9, %v995_v10  ;;  %v998_v14 = vadd.f32 %v1291_v8, %v949_v11  ;;  %v1264_v15 = vpop.f32.mrb[12].mxu0 }
 0x123   : > { %v1292_v16 = vpop.f32.mrb[12].mxu1  ;;  %v1265_v17 = vpop.f32.mrb[13].mxu0 }
 0x124   : > { %v1293_v18 = vpop.f32.mrb[13].mxu1  ;;  %v1027_v19 = vadd.f32 %v1182_v12, %v1016_v13  ;;  %v1017_v20 = vmul.f32 %v1181_v9, %v998_v14  ;;  %v1266_v21 = vadd.f32 %v1265_v17, %v1264_v15  ;;  %v1267_v23 = vpop.f32.mrb[14].mxu0 }
 0x125   : > { %v1294_v22 = vadd.f32 %v1293_v18, %v1292_v16  ;;  %v1295_v24 = vpop.f32.mrb[14].mxu1  ;;  %v1268_v25 = vpop.f32.mrb[15].mxu0 }
 0x126   : > { %v1296_v26 = vpop.f32.mrb[15].mxu1  ;;  %1031 = vst [vmem:[%s202_s12] sm:$0xff] %v1027_v19  ;;  %v1028_v27 = vadd.f32 %v1182_v12, %v1017_v20  ;;  %v954_v28 = vadd.f32 %v1266_v21, %v905_v57  ;;  %v1269_v29 = vadd.f32 %v1268_v25, %v1267_v23 }
 0x127   : > { %v1297_v30 = vadd.f32 %v1296_v26, %v1295_v24 }
 0x128   : > { %1032 = vst [vmem:[%s202_s12 + $0x8] sm:$0xff] %v1028_v27  ;;  %v1003_v31 = vadd.f32 %v1294_v22, %v954_v28  ;;  %v957_v32 = vadd.f32 %v1269_v29, %v908_v59 }
 0x12a   : > { %v1018_v33 = vmul.f32 %v1181_v9, %v1003_v31  ;;  %v1006_v34 = vadd.f32 %v1297_v30, %v957_v32 }
 0x12c   : > { %v1029_v35 = vadd.f32 %v1182_v12, %v1018_v33  ;;  %v1019_v36 = vmul.f32 %v1181_v9, %v1006_v34 }
 0x12e   : > { %1033 = vst [vmem:[%s202_s12 + $0x10] sm:$0xff] %v1029_v35  ;;  %v1030_v37 = vadd.f32 %v1182_v12, %v1019_v36 }
 0x130   : > { %1034 = vst [vmem:[%s202_s12 + $0x18] sm:$0xff] %v1030_v37 }
 0x131 PF: > { %s14_s15 = sadd.s32 1, %s1376_s15  }
 0x132   : > { %p11_p4 = scmp.ge.s32.totalorder %s14_s15, 4  }
 0x134   :  { %13 = sbr.rel (!%p11_p4) target bundleno = 1 (0x1), region = 66 }

</bundles_post_ra>
